<compile_context>
chip_gen: v5e
topology: v5e:2x2
jax: 0.10.0
libtpu: 0.0.40
codegen_flags: <defaults>
</compile_context>

<pallas_src>
import functools
import math

import numpy as np
import jax
import jax.numpy as jnp
from jax.experimental import pallas as pl
from jax.experimental.pallas import tpu as pltpu

LN_EPS = 1e-12
TOKEN_TN = 1024                 # lane tile for the 30522-wide vocab projection
VMEM_LIMIT = 64 * 1024 * 1024   # explicit scoped-VMEM limit (> v5e 16 MiB default)


# ----------------------------------------------------------------------------
# helpers
# ----------------------------------------------------------------------------
def _round_up(x, m):
    return ((x + m - 1) // m) * m


def _layernorm(x, g, b, eps=LN_EPS):
    """f32 LayerNorm over the last axis (biased variance, torch semantics)."""
    mu = jnp.mean(x, axis=-1, keepdims=True)
    xc = x - mu
    var = jnp.mean(xc * xc, axis=-1, keepdims=True)
    return xc * jax.lax.rsqrt(var + eps) * g + b


# --- single-buffering support probe (pl.Buffered(1) on constant weight blocks)
_BUFFERED1 = None


def _buffered1_supported():
    """Probe once whether pipeline_mode=pl.Buffered(1) compiles+runs on this
    backend; fall back to default double-buffering otherwise."""
    global _BUFFERED1
    if _BUFFERED1 is None:
        try:
            def _k(x_ref, o_ref):
                o_ref[...] = x_ref[...] + 1.0

            spec = pl.BlockSpec((8, 128), lambda i: (0, 0),
                                pipeline_mode=pl.Buffered(1))
            y = pl.pallas_call(
                _k,
                out_shape=jax.ShapeDtypeStruct((8, 128), jnp.float32),
                grid=(2,),
                in_specs=[spec],
                out_specs=pl.BlockSpec((8, 128), lambda i: (0, 0)),
            )(jnp.zeros((8, 128), jnp.float32))
            jax.block_until_ready(y)
            _BUFFERED1 = True
        except Exception:
            _BUFFERED1 = False
    return _BUFFERED1


def _const_spec(shape, index_map):
    """BlockSpec for a weight whose block index never changes across the grid:
       single-buffer it (halves weight VMEM) when supported."""
    if _buffered1_supported():
        return pl.BlockSpec(shape, index_map, pipeline_mode=pl.Buffered(1))
    return pl.BlockSpec(shape, index_map)


# ----------------------------------------------------------------------------
# Pallas kernels
# ----------------------------------------------------------------------------
def _embed_ln_kernel(src_ref, pos_ref, g_ref, b_ref, o_ref):
    """o = LayerNorm(2*src + pos) — encoder preamble; bf16 output."""
    x = 2.0 * src_ref[0] + pos_ref[...]
    o_ref[0] = _layernorm(x, g_ref[...], b_ref[...]).astype(o_ref.dtype)


def _encoder_layer_kernel(x_ref, wqkv_ref, bqkv_ref, wo_ref, bo_ref,
                          g1_ref, b1n_ref, w1_ref, b1_ref, w2_ref, b2_ref,
                          g2_ref, b2n_ref, o_ref, *, n_head, d_k, d_v, scale):
    """One fused encoder layer per batch element:
         x1 = LN(x + Wo @ MHA(x));  o = LN(x1 + W2 @ relu(W1 @ x1))
       qkv / per-head ctx / FFN hidden never leave VMEM."""
    x_bf = x_ref[0]                                   # (S, D) bf16
    x = x_bf.astype(jnp.float32)

    # fused QKV projection
    qkv = jnp.dot(x_bf, wqkv_ref[...],
                  preferred_element_type=jnp.float32) + bqkv_ref[...]
    hdk = n_head * d_k

    # per-head attention; ctx concatenated -> ONE output-projection matmul
    ctx_parts = []
    for h in range(n_head):
        qh = qkv[:, h * d_k:(h + 1) * d_k].astype(jnp.bfloat16)
        kh = qkv[:, hdk + h * d_k: hdk + (h + 1) * d_k].astype(jnp.bfloat16)
        vh = qkv[:, 2 * hdk + h * d_v: 2 * hdk + (h + 1) * d_v].astype(jnp.bfloat16)
        s = jax.lax.dot_general(qh, kh, (((1,), (1,)), ((), ())),
                                preferred_element_type=jnp.float32) * scale
        m = jnp.max(s, axis=-1, keepdims=True)
        p = jnp.exp(s - m)
        p = p * pl.reciprocal(jnp.sum(p, axis=-1, keepdims=True), approx=True)
        ctx_parts.append(jnp.dot(p.astype(jnp.bfloat16), vh,
                                 preferred_element_type=jnp.float32))
    ctx = jnp.concatenate(ctx_parts, axis=-1).astype(jnp.bfloat16)   # (S, H*dv)

    proj = jnp.dot(ctx, wo_ref[...],
                   preferred_element_type=jnp.float32) + bo_ref[...]
    x1 = _layernorm(proj + x, g1_ref[...], b1n_ref[...])             # f32

    # position-wise FFN on the same tile (no HBM round-trip)
    h1 = jnp.dot(x1.astype(jnp.bfloat16), w1_ref[...],
                 preferred_element_type=jnp.float32) + b1_ref[...]
    h1 = jnp.maximum(h1, 0.0)
    ffn = jnp.dot(h1.astype(jnp.bfloat16), w2_ref[...],
                  preferred_element_type=jnp.float32) + b2_ref[...]
    o_ref[0] = _layernorm(ffn + x1, g2_ref[...], b2n_ref[...]).astype(o_ref.dtype)


def _token_head_kernel(x_ref, w1_ref, b1_ref, w2_ref, b2_ref, o_ref, th_ref):
    """Fused token head: th = tanh(x@W1+b1) kept in a VMEM scratch (computed
       only at the first vocab step j==0), then o = th @ W2[:, tile] + b2[tile].
       NOTE: relies on the vocab axis being the innermost (sequential) axis."""
    @pl.when(pl.program_id(1) == 0)
    def _():
        h = jnp.dot(x_ref[...], w1_ref[...],
                    preferred_element_type=jnp.float32) + b1_ref[...]
        th_ref[...] = jnp.tanh(h)

    y = jnp.dot(th_ref[...].astype(jnp.bfloat16), w2_ref[...],
                preferred_element_type=jnp.float32) + b2_ref[...]
    o_ref[...] = y.astype(o_ref.dtype)


def _cls_head_kernel(x_ref, pre_w_ref, pre_b_ref, cls_w_ref, cls_b_ref, o_ref):
    """cls = tanh(x @ pre_w + pre_b) @ cls_w + cls_b (tiny, one fused call)."""
    h = jnp.dot(x_ref[...], pre_w_ref[...],
                preferred_element_type=jnp.float32) + pre_b_ref[...]
    h = jnp.tanh(h)
    o_ref[...] = jnp.dot(h.astype(jnp.bfloat16), cls_w_ref[...],
                         preferred_element_type=jnp.float32) + cls_b_ref[...]


# ----------------------------------------------------------------------------
# pallas_call wrappers
# ----------------------------------------------------------------------------
def embed_layernorm(src, pos, gamma, beta):
    B, S, D = src.shape
    return pl.pallas_call(
        _embed_ln_kernel,
        out_shape=jax.ShapeDtypeStruct((B, S, D), jnp.bfloat16),
        grid=(B,),
        in_specs=[
            pl.BlockSpec((1, S, D), lambda b: (b, 0, 0)),
            _const_spec((S, D), lambda b: (0, 0)),
            _const_spec((1, D), lambda b: (0, 0)),
            _const_spec((1, D), lambda b: (0, 0)),
        ],
        out_specs=pl.BlockSpec((1, S, D), lambda b: (b, 0, 0)),
        compiler_params=pltpu.CompilerParams(
            dimension_semantics=("parallel",), vmem_limit_bytes=VMEM_LIMIT),
    )(src, pos, gamma.reshape(1, D), beta.reshape(1, D))


def encoder_layer(x, layer, *, n_head, d_k, d_v):
    B, S, D = x.shape
    n_qkv = layer["wqkv"].shape[1]
    hdv = n_head * d_v
    d_inner = layer["w1"].shape[1]
    kern = functools.partial(_encoder_layer_kernel, n_head=n_head, d_k=d_k,
                             d_v=d_v, scale=1.0 / math.sqrt(d_k))

    flops = int(2 * B * S * D * n_qkv + 2 * B * n_head * S * S * (d_k + d_v)
                + 2 * B * S * hdv * D + 4 * B * S * D * d_inner)
    transcendentals = int(B * n_head * S * S)
    bytes_accessed = int(2 * B * S * D * 2
                         + 2 * (D * n_qkv + hdv * D + 2 * D * d_inner)
                         + 4 * (n_qkv + 5 * D + d_inner))
    c2d = lambda b: (0, 0)

    return pl.pallas_call(
        kern,
        out_shape=jax.ShapeDtypeStruct((B, S, D), jnp.bfloat16),
        grid=(B,),
        in_specs=[
            pl.BlockSpec((1, S, D), lambda b: (b, 0, 0)),
            _const_spec((D, n_qkv), c2d),
            _const_spec((1, n_qkv), c2d),
            _const_spec((hdv, D), c2d),
            _const_spec((1, D), c2d),
            _const_spec((1, D), c2d),
            _const_spec((1, D), c2d),
            _const_spec((D, d_inner), c2d),
            _const_spec((1, d_inner), c2d),
            _const_spec((d_inner, D), c2d),
            _const_spec((1, D), c2d),
            _const_spec((1, D), c2d),
            _const_spec((1, D), c2d),
        ],
        out_specs=pl.BlockSpec((1, S, D), lambda b: (b, 0, 0)),
        compiler_params=pltpu.CompilerParams(
            dimension_semantics=("parallel",), vmem_limit_bytes=VMEM_LIMIT),
        cost_estimate=pl.CostEstimate(flops=flops,
                                      transcendentals=transcendentals,
                                      bytes_accessed=bytes_accessed),
    )(x, layer["wqkv"], layer["bqkv"].reshape(1, n_qkv), layer["wo"],
      layer["bo"].reshape(1, D), layer["ln1_g"].reshape(1, D),
      layer["ln1_b"].reshape(1, D), layer["w1"],
      layer["b1"].reshape(1, d_inner), layer["w2"],
      layer["b2"].reshape(1, D), layer["ln2_g"].reshape(1, D),
      layer["ln2_b"].reshape(1, D))


def token_head(x2d, w1, b1, w2p, b2p, vocab, *, tn=TOKEN_TN):
    M, D = x2d.shape
    Vp = w2p.shape[1]
    # Large row tile (amortizes the vocab-weight stream); pad rows instead of
    # falling back to an oversized "tm == M" tile.
    tm = min(512, _round_up(M, 8))
    Mp = _round_up(M, tm)
    if Mp != M:
        x2d = jnp.pad(x2d, ((0, Mp - M), (0, 0)))

    flops = int(2 * Mp * D * D + 2 * Mp * D * Vp)
    bytes_accessed = int(Mp * D * 2 + D * D * 2 + D * Vp * 2 + Mp * Vp * 2)

    out = pl.pallas_call(
        _token_head_kernel,
        out_shape=jax.ShapeDtypeStruct((Mp, Vp), jnp.bfloat16),
        grid=(Mp // tm, Vp // tn),
        in_specs=[
            pl.BlockSpec((tm, D), lambda i, j: (i, 0)),
            _const_spec((D, D), lambda i, j: (0, 0)),
            _const_spec((1, D), lambda i, j: (0, 0)),
            pl.BlockSpec((D, tn), lambda i, j: (0, j)),
            pl.BlockSpec((1, tn), lambda i, j: (0, j)),
        ],
        out_specs=pl.BlockSpec((tm, tn), lambda i, j: (i, j)),
        scratch_shapes=[pltpu.VMEM((tm, D), jnp.float32)],
        compiler_params=pltpu.CompilerParams(
            dimension_semantics=("parallel", "arbitrary"),
            vmem_limit_bytes=VMEM_LIMIT),
        cost_estimate=pl.CostEstimate(flops=flops, transcendentals=int(Mp * D),
                                      bytes_accessed=bytes_accessed),
    )(x2d, w1, b1.reshape(1, D), w2p, b2p.reshape(1, Vp))
    # TODO(synk): callers tolerating a 30720-wide padded vocab could skip this
    # slice entirely; it is kept (in bf16 -> half the f32 traffic) to match the
    # reference output shape.
    return out[:M, :vocab]


def cls_head(x, pre_w, pre_b, cls_w, cls_b):
    B, D = x.shape
    C = cls_w.shape[1]
    return pl.pallas_call(
        _cls_head_kernel,
        out_shape=jax.ShapeDtypeStruct((B, C), jnp.float32),
        grid=(1,),
        in_specs=[
            pl.BlockSpec((B, D), lambda i: (0, 0)),
            pl.BlockSpec((D, D), lambda i: (0, 0)),
            pl.BlockSpec((1, D), lambda i: (0, 0)),
            pl.BlockSpec((D, C), lambda i: (0, 0)),
            pl.BlockSpec((1, C), lambda i: (0, 0)),
        ],
        out_specs=pl.BlockSpec((B, C), lambda i: (0, 0)),
        compiler_params=pltpu.CompilerParams(vmem_limit_bytes=VMEM_LIMIT),
    )(x, pre_w, pre_b.reshape(1, D), cls_w, cls_b.reshape(1, C))


# ----------------------------------------------------------------------------
# Parameter construction (deterministic, synthetic)
# ----------------------------------------------------------------------------
def sinusoid_table(n_position, d_hid):
    pos = np.arange(n_position, dtype=np.float64)[:, None]
    hid = np.arange(d_hid)[None, :]
    angle = pos / np.power(10000.0, 2.0 * (hid // 2) / d_hid)
    table = angle.copy()
    table[:, 0::2] = np.sin(angle[:, 0::2])
    table[:, 1::2] = np.cos(angle[:, 1::2])
    return jnp.asarray(table, dtype=jnp.float32)          # (n_position, d_hid)


def init_params(key, *, d_model, n_head, d_k, d_v, d_inner, n_layers,
                num_class, token_vocab, vocab_pad, n_position):
    std = 0.02
    keys = iter(jax.random.split(key, 4 * n_layers + 8))

    def dense(shape):
        # weights stored bf16 (MXU operand dtype); accumulation stays f32
        w = std * jax.random.normal(next(keys), shape, dtype=jnp.float32)
        return w.astype(jnp.bfloat16)

    params = {
        "pos_table": sinusoid_table(n_position, d_model),
        "enc_ln_g": jnp.ones((d_model,), jnp.float32),
        "enc_ln_b": jnp.zeros((d_model,), jnp.float32),
        "layers": [],
    }
    n_qkv = n_head * (2 * d_k + d_v)
    for _ in range(n_layers):
        layer = {
            "wqkv": dense((d_model, n_qkv)),        # fused [Wq | Wk | Wv]
            "bqkv": jnp.zeros((n_qkv,), jnp.float32),
            "wo": dense((n_head * d_v, d_model)),
            "bo": jnp.zeros((d_model,), jnp.float32),
            "ln1_g": jnp.ones((d_model,), jnp.float32),
            "ln1_b": jnp.zeros((d_model,), jnp.float32),
            "w1": dense((d_model, d_inner)),
            "b1": jnp.zeros((d_inner,), jnp.float32),
            "w2": dense((d_inner, d_model)),
            "b2": jnp.zeros((d_model,), jnp.float32),
            "ln2_g": jnp.ones((d_model,), jnp.float32),
            "ln2_b": jnp.zeros((d_model,), jnp.float32),
        }
        params["layers"].append(layer)

    params["pre_w"] = dense((d_model, d_model))
    params["pre_b"] = jnp.zeros((d_model,), jnp.float32)
    params["cls_w"] = dense((d_model, num_class))
    params["cls_b"] = jnp.zeros((num_class,), jnp.float32)
    params["tok1_w"] = dense((d_model, d_model))
    params["tok1_b"] = jnp.zeros((d_model,), jnp.float32)
    tok2_w = dense((d_model, token_vocab))
    # pad vocab dim to a multiple of the lane tile (lane-dense, unmasked stores)
    params["tok2_wp"] = jnp.pad(tok2_w, ((0, 0), (0, vocab_pad - token_vocab)))
    params["tok2_bp"] = jnp.zeros((vocab_pad,), jnp.float32)
    return params


# ----------------------------------------------------------------------------
# BERT_tensor forward
# ----------------------------------------------------------------------------
def bert_tensor_forward(params, w1, *, n_head, d_k, d_v, token_vocab):
    B, S, D = w1.shape

    # Encoder preamble: enc = src + (src + pos) == 2*src + pos ; then LN (bf16 out)
    pos = params["pos_table"][:S]                          # (S, D)
    x = embed_layernorm(w1, pos, params["enc_ln_g"], params["enc_ln_b"])

    # Fused encoder layers (attention + FFN in one kernel each, bf16 activations)
    for layer in params["layers"]:
        x = encoder_layer(x, layer, n_head=n_head, d_k=d_k, d_v=d_v)

    # classifier head on CLS token: Linear(Tanh(Preclassifier(x[:,0,:])))
    cls_logits = cls_head(x[:, 0, :], params["pre_w"], params["pre_b"],
                          params["cls_w"], params["cls_b"])          # (B, C) f32

    # token classifier on every token: Linear(Tanh(Linear(x)))  (bf16 logits)
    tok_logits = token_head(x.reshape(B * S, D), params["tok1_w"],
                            params["tok1_b"], params["tok2_wp"],
                            params["tok2_bp"], token_vocab)          # (B*S, V)
    return cls_logits, tok_logits.reshape(B, S, token_vocab)


# ----------------------------------------------------------------------------
# main
# ----------------------------------------------------------------------------
if __name__ == "__main__":
    # Small shapes consistent with the module's defaults.
    B, S = 2, 8
    d_model = 32
    n_head, d_k, d_v = 4, 8, 8
    d_inner = 64
    n_layers = 2
    num_class = 3
    token_vocab = 30522          # hard-coded in BERT_tensor.token_classifier
    n_position = 200
    vocab_pad = _round_up(token_vocab, TOKEN_TN)   # 30720

    # Probe single-buffering support once, before jitting the forward.
    _buffered1_supported()

    key = jax.random.PRNGKey(0)
    k_params, k_x = jax.random.split(key)

    params = init_params(
        k_params, d_model=d_model, n_head=n_head, d_k=d_k, d_v=d_v,
        d_inner=d_inner, n_layers=n_layers, num_class=num_class,
        token_vocab=token_vocab, vocab_pad=vocab_pad, n_position=n_position)

    # embedded=True -> w1 is already an embedded sequence (B, S, d_model)
    w1 = jax.random.normal(k_x, (B, S, d_model), dtype=jnp.float32)

    fwd = jax.jit(functools.partial(bert_tensor_forward, n_head=n_head,
                                    d_k=d_k, d_v=d_v, token_vocab=token_vocab))
    cls_logits, tok_logits = fwd(params, w1)
    jax.block_until_ready((cls_logits, tok_logits))

    assert cls_logits.shape == (B, num_class)
    assert tok_logits.shape == (B, S, token_vocab)
    assert jnp.all(jnp.isfinite(cls_logits)) and jnp.all(jnp.isfinite(tok_logits))
    print("KERNEL_OK")
</pallas_src>

<mosaic_0001>
module attributes {stable_mosaic.version = 11 : i64} {
  func.func @_k(%arg0: i32, %arg1: memref<8x128xf32, #tpu.memory_space<vmem>>, %arg2: memref<8x128xf32, #tpu.memory_space<vmem>>) attributes {dimension_semantics = [#tpu.dimension_semantics<arbitrary>], iteration_bounds = array<i64: 2>, scalar_prefetch = 0 : i64, scratch_operands = 0 : i64, tpu.core_type = #tpu.core_type<tc>, window_params = [{pipeline_mode = #tpu.pipeline_mode<synchronous>, transform_indices = @transform_0, window_bounds = array<i64: 8, 128>}, {pipeline_mode = #tpu.pipeline_mode<synchronous>, transform_indices = @transform_1, window_bounds = array<i64: 8, 128>}]} {
    %c0 = arith.constant 0 : index
    %c0_0 = arith.constant 0 : index
    %0 = vector.load %arg1[%c0, %c0_0] : memref<8x128xf32, #tpu.memory_space<vmem>>, vector<8x128xf32>
    %cst = arith.constant 1.000000e+00 : f32
    %1 = vector.broadcast %cst : f32 to vector<8x128xf32>
    %2 = arith.addf %0, %1 : vector<8x128xf32>
    %c0_1 = arith.constant 0 : index
    %c0_2 = arith.constant 0 : index
    %3 = vector.load %arg2[%c0_1, %c0_2] : memref<8x128xf32, #tpu.memory_space<vmem>>, vector<8x128xf32>
    tpu.vector_store %arg2[%c0_1, %c0_2], %2 {strides = array<i32>} : memref<8x128xf32, #tpu.memory_space<vmem>>, vector<8x128xf32>,
    return
  }
  func.func @transform_0(%arg0: i32) -> (i32, i32) {
    %c0_i32 = arith.constant 0 : i32
    %c0_i32_0 = arith.constant 0 : i32
    %c0_i32_1 = arith.constant 0 : i32
    return %c0_i32, %c0_i32_0 : i32, i32
  }
  func.func @transform_1(%arg0: i32) -> (i32, i32) {
    %c0_i32 = arith.constant 0 : i32
    %c0_i32_0 = arith.constant 0 : i32
    %c0_i32_1 = arith.constant 0 : i32
    return %c0_i32, %c0_i32_0 : i32, i32
  }
}

module attributes {stable_mosaic.version = 11 : i64} {
  func.func @_cls_head_kernel(%arg0: i32, %arg1: memref<2x32xbf16, #tpu.memory_space<vmem>>, %arg2: memref<32x32xbf16, #tpu.memory_space<vmem>>, %arg3: memref<1x32xf32, #tpu.memory_space<vmem>>, %arg4: memref<32x3xbf16, #tpu.memory_space<vmem>>, %arg5: memref<1x3xf32, #tpu.memory_space<vmem>>, %arg6: memref<2x3xf32, #tpu.memory_space<vmem>>) attributes {dimension_semantics = [#tpu.dimension_semantics<arbitrary>], iteration_bounds = array<i64: 1>, scalar_prefetch = 0 : i64, scratch_operands = 0 : i64, tpu.core_type = #tpu.core_type<tc>, window_params = [{pipeline_mode = #tpu.pipeline_mode<synchronous>, transform_indices = @transform_0, window_bounds = array<i64: 2, 32>}, {pipeline_mode = #tpu.pipeline_mode<synchronous>, transform_indices = @transform_1, window_bounds = array<i64: 32, 32>}, {pipeline_mode = #tpu.pipeline_mode<synchronous>, transform_indices = @transform_2, window_bounds = array<i64: 1, 32>}, {pipeline_mode = #tpu.pipeline_mode<synchronous>, transform_indices = @transform_3, window_bounds = array<i64: 32, 3>}, {pipeline_mode = #tpu.pipeline_mode<synchronous>, transform_indices = @transform_4, window_bounds = array<i64: 1, 3>}, {pipeline_mode = #tpu.pipeline_mode<synchronous>, transform_indices = @transform_5, window_bounds = array<i64: 2, 3>}]} {
    %c0 = arith.constant 0 : index
    %c0_0 = arith.constant 0 : index
    %0 = vector.load %arg1[%c0, %c0_0] : memref<2x32xbf16, #tpu.memory_space<vmem>>, vector<2x32xbf16>
    %c0_1 = arith.constant 0 : index
    %c0_2 = arith.constant 0 : index
    %1 = vector.load %arg2[%c0_1, %c0_2] : memref<32x32xbf16, #tpu.memory_space<vmem>>, vector<32x32xbf16>
    %cst = arith.constant dense<0.000000e+00> : vector<2x32xf32>
    %2 = tpu.matmul %0, %1, %cst {dimension_numbers = #tpu.dot_dimension_numbers<[1], [0], [0], [1], [0, 0, 1, 1], [], []>} : vector<2x32xbf16>, vector<32x32xbf16>, vector<2x32xf32> -> vector<2x32xf32>
    %c0_3 = arith.constant 0 : index
    %c0_4 = arith.constant 0 : index
    %3 = vector.load %arg3[%c0_3, %c0_4] : memref<1x32xf32, #tpu.memory_space<vmem>>, vector<1x32xf32>
    %4 = vector.broadcast %3 : vector<1x32xf32> to vector<2x32xf32>
    %5 = arith.addf %2, %4 : vector<2x32xf32>
    %6 = math.tanh %5 : vector<2x32xf32>
    %7 = arith.truncf %6 : vector<2x32xf32> to vector<2x32xbf16>
    %c0_5 = arith.constant 0 : index
    %c0_6 = arith.constant 0 : index
    %8 = vector.load %arg4[%c0_5, %c0_6] : memref<32x3xbf16, #tpu.memory_space<vmem>>, vector<32x3xbf16>
    %cst_7 = arith.constant dense<0.000000e+00> : vector<2x3xf32>
    %9 = tpu.matmul %7, %8, %cst_7 {dimension_numbers = #tpu.dot_dimension_numbers<[1], [0], [0], [1], [0, 0, 1, 1], [], []>} : vector<2x32xbf16>, vector<32x3xbf16>, vector<2x3xf32> -> vector<2x3xf32>
    %c0_8 = arith.constant 0 : index
    %c0_9 = arith.constant 0 : index
    %10 = vector.load %arg5[%c0_8, %c0_9] : memref<1x3xf32, #tpu.memory_space<vmem>>, vector<1x3xf32>
    %11 = vector.broadcast %10 : vector<1x3xf32> to vector<2x3xf32>
    %12 = arith.addf %9, %11 : vector<2x3xf32>
    %c0_10 = arith.constant 0 : index
    %c0_11 = arith.constant 0 : index
    %13 = vector.load %arg6[%c0_10, %c0_11] : memref<2x3xf32, #tpu.memory_space<vmem>>, vector<2x3xf32>
    tpu.vector_store %arg6[%c0_10, %c0_11], %12 {strides = array<i32>} : memref<2x3xf32, #tpu.memory_space<vmem>>, vector<2x3xf32>,
    return
  }
  func.func @transform_0(%arg0: i32) -> (i32, i32) {
    %c0_i32 = arith.constant 0 : i32
    %c0_i32_0 = arith.constant 0 : i32
    %c0_i32_1 = arith.constant 0 : i32
    return %c0_i32, %c0_i32_0 : i32, i32
  }
  func.func @transform_1(%arg0: i32) -> (i32, i32) {
    %c0_i32 = arith.constant 0 : i32
    %c0_i32_0 = arith.constant 0 : i32
    %c0_i32_1 = arith.constant 0 : i32
    return %c0_i32, %c0_i32_0 : i32, i32
  }
  func.func @transform_2(%arg0: i32) -> (i32, i32) {
    %c0_i32 = arith.constant 0 : i32
    %c0_i32_0 = arith.constant 0 : i32
    %c0_i32_1 = arith.constant 0 : i32
    return %c0_i32, %c0_i32_0 : i32, i32
  }
  func.func @transform_3(%arg0: i32) -> (i32, i32) {
    %c0_i32 = arith.constant 0 : i32
    %c0_i32_0 = arith.constant 0 : i32
    %c0_i32_1 = arith.constant 0 : i32
    return %c0_i32, %c0_i32_0 : i32, i32
  }
  func.func @transform_4(%arg0: i32) -> (i32, i32) {
    %c0_i32 = arith.constant 0 : i32
    %c0_i32_0 = arith.constant 0 : i32
    %c0_i32_1 = arith.constant 0 : i32
    return %c0_i32, %c0_i32_0 : i32, i32
  }
  func.func @transform_5(%arg0: i32) -> (i32, i32) {
    %c0_i32 = arith.constant 0 : i32
    %c0_i32_0 = arith.constant 0 : i32
    %c0_i32_1 = arith.constant 0 : i32
    return %c0_i32, %c0_i32_0 : i32, i32
  }
}

module attributes {stable_mosaic.version = 11 : i64} {
  func.func @_embed_ln_kernel(%arg0: i32, %arg1: memref<1x8x32xf32, #tpu.memory_space<vmem>>, %arg2: memref<8x32xf32, #tpu.memory_space<vmem>>, %arg3: memref<1x32xf32, #tpu.memory_space<vmem>>, %arg4: memref<1x32xf32, #tpu.memory_space<vmem>>, %arg5: memref<1x8x32xbf16, #tpu.memory_space<vmem>>) attributes {dimension_semantics = [#tpu.dimension_semantics<parallel>], iteration_bounds = array<i64: 2>, scalar_prefetch = 0 : i64, scratch_operands = 0 : i64, tpu.core_type = #tpu.core_type<tc>, window_params = [{transform_indices = @transform_0, window_bounds = array<i64: 1, 8, 32>}, {pipeline_mode = #tpu.pipeline_mode<synchronous>, transform_indices = @transform_1, window_bounds = array<i64: 8, 32>}, {pipeline_mode = #tpu.pipeline_mode<synchronous>, transform_indices = @transform_2, window_bounds = array<i64: 1, 32>}, {pipeline_mode = #tpu.pipeline_mode<synchronous>, transform_indices = @transform_3, window_bounds = array<i64: 1, 32>}, {transform_indices = @transform_4, window_bounds = array<i64: 1, 8, 32>}]} {
    %c0 = arith.constant 0 : index
    %c0_0 = arith.constant 0 : index
    %c0_1 = arith.constant 0 : index
    %0 = vector.load %arg1[%c0, %c0_0, %c0_1] : memref<1x8x32xf32, #tpu.memory_space<vmem>>, vector<1x8x32xf32>
    %1 = vector.shape_cast %0 : vector<1x8x32xf32> to vector<8x32xf32>
    %cst = arith.constant 2.000000e+00 : f32
    %2 = vector.broadcast %cst : f32 to vector<8x32xf32>
    %3 = arith.mulf %2, %1 : vector<8x32xf32>
    %c0_2 = arith.constant 0 : index
    %c0_3 = arith.constant 0 : index
    %4 = vector.load %arg2[%c0_2, %c0_3] : memref<8x32xf32, #tpu.memory_space<vmem>>, vector<8x32xf32>
    %5 = arith.addf %3, %4 : vector<8x32xf32>
    %c0_4 = arith.constant 0 : index
    %c0_5 = arith.constant 0 : index
    %6 = vector.load %arg3[%c0_4, %c0_5] : memref<1x32xf32, #tpu.memory_space<vmem>>, vector<1x32xf32>
    %c0_6 = arith.constant 0 : index
    %c0_7 = arith.constant 0 : index
    %7 = vector.load %arg4[%c0_6, %c0_7] : memref<1x32xf32, #tpu.memory_space<vmem>>, vector<1x32xf32>
    %cst_8 = arith.constant dense<0.000000e+00> : vector<8xf32>
    %8 = vector.multi_reduction <add>, %5, %cst_8 [1] : vector<8x32xf32> to vector<8xf32>
    %9 = vector.shape_cast %8 : vector<8xf32> to vector<8x1xf32>
    %cst_9 = arith.constant 3.200000e+01 : f32
    %10 = vector.broadcast %cst_9 : f32 to vector<8x1xf32>
    %11 = arith.divf %9, %10 : vector<8x1xf32>
    %12 = vector.broadcast %11 : vector<8x1xf32> to vector<8x32xf32>
    %13 = arith.subf %5, %12 : vector<8x32xf32>
    %14 = arith.mulf %13, %13 : vector<8x32xf32>
    %cst_10 = arith.constant dense<0.000000e+00> : vector<8xf32>
    %15 = vector.multi_reduction <add>, %14, %cst_10 [1] : vector<8x32xf32> to vector<8xf32>
    %16 = vector.shape_cast %15 : vector<8xf32> to vector<8x1xf32>
    %cst_11 = arith.constant 3.200000e+01 : f32
    %17 = vector.broadcast %cst_11 : f32 to vector<8x1xf32>
    %18 = arith.divf %16, %17 : vector<8x1xf32>
    %cst_12 = arith.constant 9.99999996E-13 : f32
    %19 = vector.broadcast %cst_12 : f32 to vector<8x1xf32>
    %20 = arith.addf %18, %19 : vector<8x1xf32>
    %21 = math.rsqrt %20 : vector<8x1xf32>
    %22 = vector.broadcast %21 : vector<8x1xf32> to vector<8x32xf32>
    %23 = arith.mulf %13, %22 : vector<8x32xf32>
    %24 = vector.broadcast %6 : vector<1x32xf32> to vector<8x32xf32>
    %25 = arith.mulf %23, %24 : vector<8x32xf32>
    %26 = vector.broadcast %7 : vector<1x32xf32> to vector<8x32xf32>
    %27 = arith.addf %25, %26 : vector<8x32xf32>
    %28 = arith.truncf %27 : vector<8x32xf32> to vector<8x32xbf16>
    %c0_13 = arith.constant 0 : index
    %c0_14 = arith.constant 0 : index
    %c0_15 = arith.constant 0 : index
    %29 = vector.load %arg5[%c0_13, %c0_14, %c0_15] : memref<1x8x32xbf16, #tpu.memory_space<vmem>>, vector<1x8x32xbf16>
    %30 = vector.shape_cast %29 : vector<1x8x32xbf16> to vector<8x32xbf16>
    %31 = vector.shape_cast %28 : vector<8x32xbf16> to vector<1x8x32xbf16>
    tpu.vector_store %arg5[%c0_13, %c0_14, %c0_15], %31 {strides = array<i32>} : memref<1x8x32xbf16, #tpu.memory_space<vmem>>, vector<1x8x32xbf16>,
    return
  }
  func.func @transform_0(%arg0: i32) -> (i32, i32, i32) {
    %c0_i32 = arith.constant 0 : i32
    %c0_i32_0 = arith.constant 0 : i32
    %c0_i32_1 = arith.constant 0 : i32
    return %arg0, %c0_i32, %c0_i32_0 : i32, i32, i32
  }
  func.func @transform_1(%arg0: i32) -> (i32, i32) {
    %c0_i32 = arith.constant 0 : i32
    %c0_i32_0 = arith.constant 0 : i32
    %c0_i32_1 = arith.constant 0 : i32
    return %c0_i32, %c0_i32_0 : i32, i32
  }
  func.func @transform_2(%arg0: i32) -> (i32, i32) {
    %c0_i32 = arith.constant 0 : i32
    %c0_i32_0 = arith.constant 0 : i32
    %c0_i32_1 = arith.constant 0 : i32
    return %c0_i32, %c0_i32_0 : i32, i32
  }
  func.func @transform_3(%arg0: i32) -> (i32, i32) {
    %c0_i32 = arith.constant 0 : i32
    %c0_i32_0 = arith.constant 0 : i32
    %c0_i32_1 = arith.constant 0 : i32
    return %c0_i32, %c0_i32_0 : i32, i32
  }
  func.func @transform_4(%arg0: i32) -> (i32, i32, i32) {
    %c0_i32 = arith.constant 0 : i32
    %c0_i32_0 = arith.constant 0 : i32
    %c0_i32_1 = arith.constant 0 : i32
    return %arg0, %c0_i32, %c0_i32_0 : i32, i32, i32
  }
}

module attributes {stable_mosaic.version = 11 : i64} {
  func.func @_encoder_layer_kernel(%arg0: i32, %arg1: memref<1x8x32xbf16, #tpu.memory_space<vmem>>, %arg2: memref<32x96xbf16, #tpu.memory_space<vmem>>, %arg3: memref<1x96xf32, #tpu.memory_space<vmem>>, %arg4: memref<32x32xbf16, #tpu.memory_space<vmem>>, %arg5: memref<1x32xf32, #tpu.memory_space<vmem>>, %arg6: memref<1x32xf32, #tpu.memory_space<vmem>>, %arg7: memref<1x32xf32, #tpu.memory_space<vmem>>, %arg8: memref<32x64xbf16, #tpu.memory_space<vmem>>, %arg9: memref<1x64xf32, #tpu.memory_space<vmem>>, %arg10: memref<64x32xbf16, #tpu.memory_space<vmem>>, %arg11: memref<1x32xf32, #tpu.memory_space<vmem>>, %arg12: memref<1x32xf32, #tpu.memory_space<vmem>>, %arg13: memref<1x32xf32, #tpu.memory_space<vmem>>, %arg14: memref<1x8x32xbf16, #tpu.memory_space<vmem>>) attributes {dimension_semantics = [#tpu.dimension_semantics<parallel>], iteration_bounds = array<i64: 2>, scalar_prefetch = 0 : i64, scratch_operands = 0 : i64, tpu.core_type = #tpu.core_type<tc>, window_params = [{transform_indices = @transform_0, window_bounds = array<i64: 1, 8, 32>}, {pipeline_mode = #tpu.pipeline_mode<synchronous>, transform_indices = @transform_1, window_bounds = array<i64: 32, 96>}, {pipeline_mode = #tpu.pipeline_mode<synchronous>, transform_indices = @transform_2, window_bounds = array<i64: 1, 96>}, {pipeline_mode = #tpu.pipeline_mode<synchronous>, transform_indices = @transform_3, window_bounds = array<i64: 32, 32>}, {pipeline_mode = #tpu.pipeline_mode<synchronous>, transform_indices = @transform_4, window_bounds = array<i64: 1, 32>}, {pipeline_mode = #tpu.pipeline_mode<synchronous>, transform_indices = @transform_5, window_bounds = array<i64: 1, 32>}, {pipeline_mode = #tpu.pipeline_mode<synchronous>, transform_indices = @transform_6, window_bounds = array<i64: 1, 32>}, {pipeline_mode = #tpu.pipeline_mode<synchronous>, transform_indices = @transform_7, window_bounds = array<i64: 32, 64>}, {pipeline_mode = #tpu.pipeline_mode<synchronous>, transform_indices = @transform_8, window_bounds = array<i64: 1, 64>}, {pipeline_mode = #tpu.pipeline_mode<synchronous>, transform_indices = @transform_9, window_bounds = array<i64: 64, 32>}, {pipeline_mode = #tpu.pipeline_mode<synchronous>, transform_indices = @transform_10, window_bounds = array<i64: 1, 32>}, {pipeline_mode = #tpu.pipeline_mode<synchronous>, transform_indices = @transform_11, window_bounds = array<i64: 1, 32>}, {pipeline_mode = #tpu.pipeline_mode<synchronous>, transform_indices = @transform_12, window_bounds = array<i64: 1, 32>}, {transform_indices = @transform_13, window_bounds = array<i64: 1, 8, 32>}]} {
    %c0 = arith.constant 0 : index
    %c0_0 = arith.constant 0 : index
    %c0_1 = arith.constant 0 : index
    %0 = vector.load %arg1[%c0, %c0_0, %c0_1] : memref<1x8x32xbf16, #tpu.memory_space<vmem>>, vector<1x8x32xbf16>
    %1 = vector.shape_cast %0 : vector<1x8x32xbf16> to vector<8x32xbf16>
    %2 = arith.extf %1 : vector<8x32xbf16> to vector<8x32xf32>
    %c0_2 = arith.constant 0 : index
    %c0_3 = arith.constant 0 : index
    %3 = vector.load %arg2[%c0_2, %c0_3] : memref<32x96xbf16, #tpu.memory_space<vmem>>, vector<32x96xbf16>
    %cst = arith.constant dense<0.000000e+00> : vector<8x96xf32>
    %4 = tpu.matmul %1, %3, %cst {dimension_numbers = #tpu.dot_dimension_numbers<[1], [0], [0], [1], [0, 0, 1, 1], [], []>} : vector<8x32xbf16>, vector<32x96xbf16>, vector<8x96xf32> -> vector<8x96xf32>
    %c0_4 = arith.constant 0 : index
    %c0_5 = arith.constant 0 : index
    %5 = vector.load %arg3[%c0_4, %c0_5] : memref<1x96xf32, #tpu.memory_space<vmem>>, vector<1x96xf32>
    %6 = vector.broadcast %5 : vector<1x96xf32> to vector<8x96xf32>
    %7 = arith.addf %4, %6 : vector<8x96xf32>
    %8 = vector.extract_strided_slice %7 {offsets = [0, 0], sizes = [8, 8], strides = [1, 1]} : vector<8x96xf32> to vector<8x8xf32>
    %9 = arith.truncf %8 : vector<8x8xf32> to vector<8x8xbf16>
    %10 = vector.extract_strided_slice %7 {offsets = [0, 32], sizes = [8, 8], strides = [1, 1]} : vector<8x96xf32> to vector<8x8xf32>
    %11 = arith.truncf %10 : vector<8x8xf32> to vector<8x8xbf16>
    %12 = vector.extract_strided_slice %7 {offsets = [0, 64], sizes = [8, 8], strides = [1, 1]} : vector<8x96xf32> to vector<8x8xf32>
    %13 = arith.truncf %12 : vector<8x8xf32> to vector<8x8xbf16>
    %cst_6 = arith.constant dense<0.000000e+00> : vector<8x8xf32>
    %14 = tpu.matmul %9, %11, %cst_6 {dimension_numbers = #tpu.dot_dimension_numbers<[1], [1], [0], [0], [0, 0, 1, 0], [], []>} : vector<8x8xbf16>, vector<8x8xbf16>, vector<8x8xf32> -> vector<8x8xf32>
    %cst_7 = arith.constant 0.353553385 : f32
    %15 = vector.broadcast %cst_7 : f32 to vector<8x8xf32>
    %16 = arith.mulf %14, %15 : vector<8x8xf32>
    %cst_8 = arith.constant dense<0xFF800000> : vector<8xf32>
    %17 = vector.multi_reduction <maximumf>, %16, %cst_8 [1] : vector<8x8xf32> to vector<8xf32>
    %18 = vector.shape_cast %17 : vector<8xf32> to vector<8x1xf32>
    %19 = vector.broadcast %18 : vector<8x1xf32> to vector<8x8xf32>
    %20 = arith.subf %16, %19 : vector<8x8xf32>
    %21 = math.exp %20 : vector<8x8xf32>
    %cst_9 = arith.constant dense<0.000000e+00> : vector<8xf32>
    %22 = vector.multi_reduction <add>, %21, %cst_9 [1] : vector<8x8xf32> to vector<8xf32>
    %23 = vector.shape_cast %22 : vector<8xf32> to vector<8x1xf32>
    %24 = tpu.reciprocal %23 {approx = true} : vector<8x1xf32> -> vector<8x1xf32>
    %25 = vector.broadcast %24 : vector<8x1xf32> to vector<8x8xf32>
    %26 = arith.mulf %21, %25 : vector<8x8xf32>
    %27 = arith.truncf %26 : vector<8x8xf32> to vector<8x8xbf16>
    %cst_10 = arith.constant dense<0.000000e+00> : vector<8x8xf32>
    %28 = tpu.matmul %27, %13, %cst_10 {dimension_numbers = #tpu.dot_dimension_numbers<[1], [0], [0], [1], [0, 0, 1, 1], [], []>} : vector<8x8xbf16>, vector<8x8xbf16>, vector<8x8xf32> -> vector<8x8xf32>
    %29 = vector.extract_strided_slice %7 {offsets = [0, 8], sizes = [8, 8], strides = [1, 1]} : vector<8x96xf32> to vector<8x8xf32>
    %30 = arith.truncf %29 : vector<8x8xf32> to vector<8x8xbf16>
    %31 = vector.extract_strided_slice %7 {offsets = [0, 40], sizes = [8, 8], strides = [1, 1]} : vector<8x96xf32> to vector<8x8xf32>
    %32 = arith.truncf %31 : vector<8x8xf32> to vector<8x8xbf16>
    %33 = vector.extract_strided_slice %7 {offsets = [0, 72], sizes = [8, 8], strides = [1, 1]} : vector<8x96xf32> to vector<8x8xf32>
    %34 = arith.truncf %33 : vector<8x8xf32> to vector<8x8xbf16>
    %cst_11 = arith.constant dense<0.000000e+00> : vector<8x8xf32>
    %35 = tpu.matmul %30, %32, %cst_11 {dimension_numbers = #tpu.dot_dimension_numbers<[1], [1], [0], [0], [0, 0, 1, 0], [], []>} : vector<8x8xbf16>, vector<8x8xbf16>, vector<8x8xf32> -> vector<8x8xf32>
    %cst_12 = arith.constant 0.353553385 : f32
    %36 = vector.broadcast %cst_12 : f32 to vector<8x8xf32>
    %37 = arith.mulf %35, %36 : vector<8x8xf32>
    %cst_13 = arith.constant dense<0xFF800000> : vector<8xf32>
    %38 = vector.multi_reduction <maximumf>, %37, %cst_13 [1] : vector<8x8xf32> to vector<8xf32>
    %39 = vector.shape_cast %38 : vector<8xf32> to vector<8x1xf32>
    %40 = vector.broadcast %39 : vector<8x1xf32> to vector<8x8xf32>
    %41 = arith.subf %37, %40 : vector<8x8xf32>
    %42 = math.exp %41 : vector<8x8xf32>
    %cst_14 = arith.constant dense<0.000000e+00> : vector<8xf32>
    %43 = vector.multi_reduction <add>, %42, %cst_14 [1] : vector<8x8xf32> to vector<8xf32>
    %44 = vector.shape_cast %43 : vector<8xf32> to vector<8x1xf32>
    %45 = tpu.reciprocal %44 {approx = true} : vector<8x1xf32> -> vector<8x1xf32>
    %46 = vector.broadcast %45 : vector<8x1xf32> to vector<8x8xf32>
    %47 = arith.mulf %42, %46 : vector<8x8xf32>
    %48 = arith.truncf %47 : vector<8x8xf32> to vector<8x8xbf16>
    %cst_15 = arith.constant dense<0.000000e+00> : vector<8x8xf32>
    %49 = tpu.matmul %48, %34, %cst_15 {dimension_numbers = #tpu.dot_dimension_numbers<[1], [0], [0], [1], [0, 0, 1, 1], [], []>} : vector<8x8xbf16>, vector<8x8xbf16>, vector<8x8xf32> -> vector<8x8xf32>
    %50 = vector.extract_strided_slice %7 {offsets = [0, 16], sizes = [8, 8], strides = [1, 1]} : vector<8x96xf32> to vector<8x8xf32>
    %51 = arith.truncf %50 : vector<8x8xf32> to vector<8x8xbf16>
    %52 = vector.extract_strided_slice %7 {offsets = [0, 48], sizes = [8, 8], strides = [1, 1]} : vector<8x96xf32> to vector<8x8xf32>
    %53 = arith.truncf %52 : vector<8x8xf32> to vector<8x8xbf16>
    %54 = vector.extract_strided_slice %7 {offsets = [0, 80], sizes = [8, 8], strides = [1, 1]} : vector<8x96xf32> to vector<8x8xf32>
    %55 = arith.truncf %54 : vector<8x8xf32> to vector<8x8xbf16>
    %cst_16 = arith.constant dense<0.000000e+00> : vector<8x8xf32>
    %56 = tpu.matmul %51, %53, %cst_16 {dimension_numbers = #tpu.dot_dimension_numbers<[1], [1], [0], [0], [0, 0, 1, 0], [], []>} : vector<8x8xbf16>, vector<8x8xbf16>, vector<8x8xf32> -> vector<8x8xf32>
    %cst_17 = arith.constant 0.353553385 : f32
    %57 = vector.broadcast %cst_17 : f32 to vector<8x8xf32>
    %58 = arith.mulf %56, %57 : vector<8x8xf32>
    %cst_18 = arith.constant dense<0xFF800000> : vector<8xf32>
    %59 = vector.multi_reduction <maximumf>, %58, %cst_18 [1] : vector<8x8xf32> to vector<8xf32>
    %60 = vector.shape_cast %59 : vector<8xf32> to vector<8x1xf32>
    %61 = vector.broadcast %60 : vector<8x1xf32> to vector<8x8xf32>
    %62 = arith.subf %58, %61 : vector<8x8xf32>
    %63 = math.exp %62 : vector<8x8xf32>
    %cst_19 = arith.constant dense<0.000000e+00> : vector<8xf32>
    %64 = vector.multi_reduction <add>, %63, %cst_19 [1] : vector<8x8xf32> to vector<8xf32>
    %65 = vector.shape_cast %64 : vector<8xf32> to vector<8x1xf32>
    %66 = tpu.reciprocal %65 {approx = true} : vector<8x1xf32> -> vector<8x1xf32>
    %67 = vector.broadcast %66 : vector<8x1xf32> to vector<8x8xf32>
    %68 = arith.mulf %63, %67 : vector<8x8xf32>
    %69 = arith.truncf %68 : vector<8x8xf32> to vector<8x8xbf16>
    %cst_20 = arith.constant dense<0.000000e+00> : vector<8x8xf32>
    %70 = tpu.matmul %69, %55, %cst_20 {dimension_numbers = #tpu.dot_dimension_numbers<[1], [0], [0], [1], [0, 0, 1, 1], [], []>} : vector<8x8xbf16>, vector<8x8xbf16>, vector<8x8xf32> -> vector<8x8xf32>
    %71 = vector.extract_strided_slice %7 {offsets = [0, 24], sizes = [8, 8], strides = [1, 1]} : vector<8x96xf32> to vector<8x8xf32>
    %72 = arith.truncf %71 : vector<8x8xf32> to vector<8x8xbf16>
    %73 = vector.extract_strided_slice %7 {offsets = [0, 56], sizes = [8, 8], strides = [1, 1]} : vector<8x96xf32> to vector<8x8xf32>
    %74 = arith.truncf %73 : vector<8x8xf32> to vector<8x8xbf16>
    %75 = vector.extract_strided_slice %7 {offsets = [0, 88], sizes = [8, 8], strides = [1, 1]} : vector<8x96xf32> to vector<8x8xf32>
    %76 = arith.truncf %75 : vector<8x8xf32> to vector<8x8xbf16>
    %cst_21 = arith.constant dense<0.000000e+00> : vector<8x8xf32>
    %77 = tpu.matmul %72, %74, %cst_21 {dimension_numbers = #tpu.dot_dimension_numbers<[1], [1], [0], [0], [0, 0, 1, 0], [], []>} : vector<8x8xbf16>, vector<8x8xbf16>, vector<8x8xf32> -> vector<8x8xf32>
    %cst_22 = arith.constant 0.353553385 : f32
    %78 = vector.broadcast %cst_22 : f32 to vector<8x8xf32>
    %79 = arith.mulf %77, %78 : vector<8x8xf32>
    %cst_23 = arith.constant dense<0xFF800000> : vector<8xf32>
    %80 = vector.multi_reduction <maximumf>, %79, %cst_23 [1] : vector<8x8xf32> to vector<8xf32>
    %81 = vector.shape_cast %80 : vector<8xf32> to vector<8x1xf32>
    %82 = vector.broadcast %81 : vector<8x1xf32> to vector<8x8xf32>
    %83 = arith.subf %79, %82 : vector<8x8xf32>
    %84 = math.exp %83 : vector<8x8xf32>
    %cst_24 = arith.constant dense<0.000000e+00> : vector<8xf32>
    %85 = vector.multi_reduction <add>, %84, %cst_24 [1] : vector<8x8xf32> to vector<8xf32>
    %86 = vector.shape_cast %85 : vector<8xf32> to vector<8x1xf32>
    %87 = tpu.reciprocal %86 {approx = true} : vector<8x1xf32> -> vector<8x1xf32>
    %88 = vector.broadcast %87 : vector<8x1xf32> to vector<8x8xf32>
    %89 = arith.mulf %84, %88 : vector<8x8xf32>
    %90 = arith.truncf %89 : vector<8x8xf32> to vector<8x8xbf16>
    %cst_25 = arith.constant dense<0.000000e+00> : vector<8x8xf32>
    %91 = tpu.matmul %90, %76, %cst_25 {dimension_numbers = #tpu.dot_dimension_numbers<[1], [0], [0], [1], [0, 0, 1, 1], [], []>} : vector<8x8xbf16>, vector<8x8xbf16>, vector<8x8xf32> -> vector<8x8xf32>
    %92 = tpu.concatenate %28, %49, %70, %91 in 1 : vector<8x8xf32>, vector<8x8xf32>, vector<8x8xf32>, vector<8x8xf32> -> vector<8x32xf32>
    %93 = arith.truncf %92 : vector<8x32xf32> to vector<8x32xbf16>
    %c0_26 = arith.constant 0 : index
    %c0_27 = arith.constant 0 : index
    %94 = vector.load %arg4[%c0_26, %c0_27] : memref<32x32xbf16, #tpu.memory_space<vmem>>, vector<32x32xbf16>
    %cst_28 = arith.constant dense<0.000000e+00> : vector<8x32xf32>
    %95 = tpu.matmul %93, %94, %cst_28 {dimension_numbers = #tpu.dot_dimension_numbers<[1], [0], [0], [1], [0, 0, 1, 1], [], []>} : vector<8x32xbf16>, vector<32x32xbf16>, vector<8x32xf32> -> vector<8x32xf32>
    %c0_29 = arith.constant 0 : index
    %c0_30 = arith.constant 0 : index
    %96 = vector.load %arg5[%c0_29, %c0_30] : memref<1x32xf32, #tpu.memory_space<vmem>>, vector<1x32xf32>
    %97 = vector.broadcast %96 : vector<1x32xf32> to vector<8x32xf32>
    %98 = arith.addf %95, %97 : vector<8x32xf32>
    %99 = arith.addf %98, %2 : vector<8x32xf32>
    %c0_31 = arith.constant 0 : index
    %c0_32 = arith.constant 0 : index
    %100 = vector.load %arg6[%c0_31, %c0_32] : memref<1x32xf32, #tpu.memory_space<vmem>>, vector<1x32xf32>
    %c0_33 = arith.constant 0 : index
    %c0_34 = arith.constant 0 : index
    %101 = vector.load %arg7[%c0_33, %c0_34] : memref<1x32xf32, #tpu.memory_space<vmem>>, vector<1x32xf32>
    %cst_35 = arith.constant dense<0.000000e+00> : vector<8xf32>
    %102 = vector.multi_reduction <add>, %99, %cst_35 [1] : vector<8x32xf32> to vector<8xf32>
    %103 = vector.shape_cast %102 : vector<8xf32> to vector<8x1xf32>
    %cst_36 = arith.constant 3.200000e+01 : f32
    %104 = vector.broadcast %cst_36 : f32 to vector<8x1xf32>
    %105 = arith.divf %103, %104 : vector<8x1xf32>
    %106 = vector.broadcast %105 : vector<8x1xf32> to vector<8x32xf32>
    %107 = arith.subf %99, %106 : vector<8x32xf32>
    %108 = arith.mulf %107, %107 : vector<8x32xf32>
    %cst_37 = arith.constant dense<0.000000e+00> : vector<8xf32>
    %109 = vector.multi_reduction <add>, %108, %cst_37 [1] : vector<8x32xf32> to vector<8xf32>
    %110 = vector.shape_cast %109 : vector<8xf32> to vector<8x1xf32>
    %cst_38 = arith.constant 3.200000e+01 : f32
    %111 = vector.broadcast %cst_38 : f32 to vector<8x1xf32>
    %112 = arith.divf %110, %111 : vector<8x1xf32>
    %cst_39 = arith.constant 9.99999996E-13 : f32
    %113 = vector.broadcast %cst_39 : f32 to vector<8x1xf32>
    %114 = arith.addf %112, %113 : vector<8x1xf32>
    %115 = math.rsqrt %114 : vector<8x1xf32>
    %116 = vector.broadcast %115 : vector<8x1xf32> to vector<8x32xf32>
    %117 = arith.mulf %107, %116 : vector<8x32xf32>
    %118 = vector.broadcast %100 : vector<1x32xf32> to vector<8x32xf32>
    %119 = arith.mulf %117, %118 : vector<8x32xf32>
    %120 = vector.broadcast %101 : vector<1x32xf32> to vector<8x32xf32>
    %121 = arith.addf %119, %120 : vector<8x32xf32>
    %122 = arith.truncf %121 : vector<8x32xf32> to vector<8x32xbf16>
    %c0_40 = arith.constant 0 : index
    %c0_41 = arith.constant 0 : index
    %123 = vector.load %arg8[%c0_40, %c0_41] : memref<32x64xbf16, #tpu.memory_space<vmem>>, vector<32x64xbf16>
    %cst_42 = arith.constant dense<0.000000e+00> : vector<8x64xf32>
    %124 = tpu.matmul %122, %123, %cst_42 {dimension_numbers = #tpu.dot_dimension_numbers<[1], [0], [0], [1], [0, 0, 1, 1], [], []>} : vector<8x32xbf16>, vector<32x64xbf16>, vector<8x64xf32> -> vector<8x64xf32>
    %c0_43 = arith.constant 0 : index
    %c0_44 = arith.constant 0 : index
    %125 = vector.load %arg9[%c0_43, %c0_44] : memref<1x64xf32, #tpu.memory_space<vmem>>, vector<1x64xf32>
    %126 = vector.broadcast %125 : vector<1x64xf32> to vector<8x64xf32>
    %127 = arith.addf %124, %126 : vector<8x64xf32>
    %cst_45 = arith.constant 0.000000e+00 : f32
    %128 = vector.broadcast %cst_45 : f32 to vector<8x64xf32>
    %129 = arith.maximumf %127, %128 : vector<8x64xf32>
    %130 = arith.truncf %129 : vector<8x64xf32> to vector<8x64xbf16>
    %c0_46 = arith.constant 0 : index
    %c0_47 = arith.constant 0 : index
    %131 = vector.load %arg10[%c0_46, %c0_47] : memref<64x32xbf16, #tpu.memory_space<vmem>>, vector<64x32xbf16>
    %cst_48 = arith.constant dense<0.000000e+00> : vector<8x32xf32>
    %132 = tpu.matmul %130, %131, %cst_48 {dimension_numbers = #tpu.dot_dimension_numbers<[1], [0], [0], [1], [0, 0, 1, 1], [], []>} : vector<8x64xbf16>, vector<64x32xbf16>, vector<8x32xf32> -> vector<8x32xf32>
    %c0_49 = arith.constant 0 : index
    %c0_50 = arith.constant 0 : index
    %133 = vector.load %arg11[%c0_49, %c0_50] : memref<1x32xf32, #tpu.memory_space<vmem>>, vector<1x32xf32>
    %134 = vector.broadcast %133 : vector<1x32xf32> to vector<8x32xf32>
    %135 = arith.addf %132, %134 : vector<8x32xf32>
    %136 = arith.addf %135, %121 : vector<8x32xf32>
    %c0_51 = arith.constant 0 : index
    %c0_52 = arith.constant 0 : index
    %137 = vector.load %arg12[%c0_51, %c0_52] : memref<1x32xf32, #tpu.memory_space<vmem>>, vector<1x32xf32>
    %c0_53 = arith.constant 0 : index
    %c0_54 = arith.constant 0 : index
    %138 = vector.load %arg13[%c0_53, %c0_54] : memref<1x32xf32, #tpu.memory_space<vmem>>, vector<1x32xf32>
    %cst_55 = arith.constant dense<0.000000e+00> : vector<8xf32>
    %139 = vector.multi_reduction <add>, %136, %cst_55 [1] : vector<8x32xf32> to vector<8xf32>
    %140 = vector.shape_cast %139 : vector<8xf32> to vector<8x1xf32>
    %cst_56 = arith.constant 3.200000e+01 : f32
    %141 = vector.broadcast %cst_56 : f32 to vector<8x1xf32>
    %142 = arith.divf %140, %141 : vector<8x1xf32>
    %143 = vector.broadcast %142 : vector<8x1xf32> to vector<8x32xf32>
    %144 = arith.subf %136, %143 : vector<8x32xf32>
    %145 = arith.mulf %144, %144 : vector<8x32xf32>
    %cst_57 = arith.constant dense<0.000000e+00> : vector<8xf32>
    %146 = vector.multi_reduction <add>, %145, %cst_57 [1] : vector<8x32xf32> to vector<8xf32>
    %147 = vector.shape_cast %146 : vector<8xf32> to vector<8x1xf32>
    %cst_58 = arith.constant 3.200000e+01 : f32
    %148 = vector.broadcast %cst_58 : f32 to vector<8x1xf32>
    %149 = arith.divf %147, %148 : vector<8x1xf32>
    %cst_59 = arith.constant 9.99999996E-13 : f32
    %150 = vector.broadcast %cst_59 : f32 to vector<8x1xf32>
    %151 = arith.addf %149, %150 : vector<8x1xf32>
    %152 = math.rsqrt %151 : vector<8x1xf32>
    %153 = vector.broadcast %152 : vector<8x1xf32> to vector<8x32xf32>
    %154 = arith.mulf %144, %153 : vector<8x32xf32>
    %155 = vector.broadcast %137 : vector<1x32xf32> to vector<8x32xf32>
    %156 = arith.mulf %154, %155 : vector<8x32xf32>
    %157 = vector.broadcast %138 : vector<1x32xf32> to vector<8x32xf32>
    %158 = arith.addf %156, %157 : vector<8x32xf32>
    %159 = arith.truncf %158 : vector<8x32xf32> to vector<8x32xbf16>
    %c0_60 = arith.constant 0 : index
    %c0_61 = arith.constant 0 : index
    %c0_62 = arith.constant 0 : index
    %160 = vector.load %arg14[%c0_60, %c0_61, %c0_62] : memref<1x8x32xbf16, #tpu.memory_space<vmem>>, vector<1x8x32xbf16>
    %161 = vector.shape_cast %160 : vector<1x8x32xbf16> to vector<8x32xbf16>
    %162 = vector.shape_cast %159 : vector<8x32xbf16> to vector<1x8x32xbf16>
    tpu.vector_store %arg14[%c0_60, %c0_61, %c0_62], %162 {strides = array<i32>} : memref<1x8x32xbf16, #tpu.memory_space<vmem>>, vector<1x8x32xbf16>,
    return
  }
  func.func @transform_0(%arg0: i32) -> (i32, i32, i32) {
    %c0_i32 = arith.constant 0 : i32
    %c0_i32_0 = arith.constant 0 : i32
    %c0_i32_1 = arith.constant 0 : i32
    return %arg0, %c0_i32, %c0_i32_0 : i32, i32, i32
  }
  func.func @transform_1(%arg0: i32) -> (i32, i32) {
    %c0_i32 = arith.constant 0 : i32
    %c0_i32_0 = arith.constant 0 : i32
    %c0_i32_1 = arith.constant 0 : i32
    return %c0_i32, %c0_i32_0 : i32, i32
  }
  func.func @transform_2(%arg0: i32) -> (i32, i32) {
    %c0_i32 = arith.constant 0 : i32
    %c0_i32_0 = arith.constant 0 : i32
    %c0_i32_1 = arith.constant 0 : i32
    return %c0_i32, %c0_i32_0 : i32, i32
  }
  func.func @transform_3(%arg0: i32) -> (i32, i32) {
    %c0_i32 = arith.constant 0 : i32
    %c0_i32_0 = arith.constant 0 : i32
    %c0_i32_1 = arith.constant 0 : i32
    return %c0_i32, %c0_i32_0 : i32, i32
  }
  func.func @transform_4(%arg0: i32) -> (i32, i32) {
    %c0_i32 = arith.constant 0 : i32
    %c0_i32_0 = arith.constant 0 : i32
    %c0_i32_1 = arith.constant 0 : i32
    return %c0_i32, %c0_i32_0 : i32, i32
  }
  func.func @transform_5(%arg0: i32) -> (i32, i32) {
    %c0_i32 = arith.constant 0 : i32
    %c0_i32_0 = arith.constant 0 : i32
    %c0_i32_1 = arith.constant 0 : i32
    return %c0_i32, %c0_i32_0 : i32, i32
  }
  func.func @transform_6(%arg0: i32) -> (i32, i32) {
    %c0_i32 = arith.constant 0 : i32
    %c0_i32_0 = arith.constant 0 : i32
    %c0_i32_1 = arith.constant 0 : i32
    return %c0_i32, %c0_i32_0 : i32, i32
  }
  func.func @transform_7(%arg0: i32) -> (i32, i32) {
    %c0_i32 = arith.constant 0 : i32
    %c0_i32_0 = arith.constant 0 : i32
    %c0_i32_1 = arith.constant 0 : i32
    return %c0_i32, %c0_i32_0 : i32, i32
  }
  func.func @transform_8(%arg0: i32) -> (i32, i32) {
    %c0_i32 = arith.constant 0 : i32
    %c0_i32_0 = arith.constant 0 : i32
    %c0_i32_1 = arith.constant 0 : i32
    return %c0_i32, %c0_i32_0 : i32, i32
  }
  func.func @transform_9(%arg0: i32) -> (i32, i32) {
    %c0_i32 = arith.constant 0 : i32
    %c0_i32_0 = arith.constant 0 : i32
    %c0_i32_1 = arith.constant 0 : i32
    return %c0_i32, %c0_i32_0 : i32, i32
  }
  func.func @transform_10(%arg0: i32) -> (i32, i32) {
    %c0_i32 = arith.constant 0 : i32
    %c0_i32_0 = arith.constant 0 : i32
    %c0_i32_1 = arith.constant 0 : i32
    return %c0_i32, %c0_i32_0 : i32, i32
  }
  func.func @transform_11(%arg0: i32) -> (i32, i32) {
    %c0_i32 = arith.constant 0 : i32
    %c0_i32_0 = arith.constant 0 : i32
    %c0_i32_1 = arith.constant 0 : i32
    return %c0_i32, %c0_i32_0 : i32, i32
  }
  func.func @transform_12(%arg0: i32) -> (i32, i32) {
    %c0_i32 = arith.constant 0 : i32
    %c0_i32_0 = arith.constant 0 : i32
    %c0_i32_1 = arith.constant 0 : i32
    return %c0_i32, %c0_i32_0 : i32, i32
  }
  func.func @transform_13(%arg0: i32) -> (i32, i32, i32) {
    %c0_i32 = arith.constant 0 : i32
    %c0_i32_0 = arith.constant 0 : i32
    %c0_i32_1 = arith.constant 0 : i32
    return %arg0, %c0_i32, %c0_i32_0 : i32, i32, i32
  }
}

module attributes {stable_mosaic.version = 11 : i64} {
  func.func @_token_head_kernel(%arg0: i32, %arg1: i32, %arg2: memref<16x32xbf16, #tpu.memory_space<vmem>>, %arg3: memref<32x32xbf16, #tpu.memory_space<vmem>>, %arg4: memref<1x32xf32, #tpu.memory_space<vmem>>, %arg5: memref<32x1024xbf16, #tpu.memory_space<vmem>>, %arg6: memref<1x1024xf32, #tpu.memory_space<vmem>>, %arg7: memref<16x1024xbf16, #tpu.memory_space<vmem>>, %arg8: memref<16x32xf32, #tpu.memory_space<vmem>>) attributes {dimension_semantics = [#tpu.dimension_semantics<parallel>, #tpu.dimension_semantics<arbitrary>], iteration_bounds = array<i64: 1, 30>, scalar_prefetch = 0 : i64, scratch_operands = 1 : i64, tpu.core_type = #tpu.core_type<tc>, window_params = [{transform_indices = @transform_0, window_bounds = array<i64: 16, 32>}, {pipeline_mode = #tpu.pipeline_mode<synchronous>, transform_indices = @transform_1, window_bounds = array<i64: 32, 32>}, {pipeline_mode = #tpu.pipeline_mode<synchronous>, transform_indices = @transform_2, window_bounds = array<i64: 1, 32>}, {transform_indices = @transform_3, window_bounds = array<i64: 32, 1024>}, {transform_indices = @transform_4, window_bounds = array<i64: 1, 1024>}, {transform_indices = @transform_5, window_bounds = array<i64: 16, 1024>}]} {
    %c0_i32 = arith.constant 0 : i32
    %0 = arith.cmpi eq, %arg1, %c0_i32 : i32
    %1 = arith.extui %0 : i1 to i32
    %c0_i32_0 = arith.constant 0 : i32
    %2 = arith.cmpi ne, %1, %c0_i32_0 : i32
    scf.if %2 {
      %c0_8 = arith.constant 0 : index
      %c0_9 = arith.constant 0 : index
      %12 = vector.load %arg2[%c0_8, %c0_9] : memref<16x32xbf16, #tpu.memory_space<vmem>>, vector<16x32xbf16>
      %c0_10 = arith.constant 0 : index
      %c0_11 = arith.constant 0 : index
      %13 = vector.load %arg3[%c0_10, %c0_11] : memref<32x32xbf16, #tpu.memory_space<vmem>>, vector<32x32xbf16>
      %cst_12 = arith.constant dense<0.000000e+00> : vector<16x32xf32>
      %14 = tpu.matmul %12, %13, %cst_12 {dimension_numbers = #tpu.dot_dimension_numbers<[1], [0], [0], [1], [0, 0, 1, 1], [], []>} : vector<16x32xbf16>, vector<32x32xbf16>, vector<16x32xf32> -> vector<16x32xf32>
      %c0_13 = arith.constant 0 : index
      %c0_14 = arith.constant 0 : index
      %15 = vector.load %arg4[%c0_13, %c0_14] : memref<1x32xf32, #tpu.memory_space<vmem>>, vector<1x32xf32>
      %16 = vector.broadcast %15 : vector<1x32xf32> to vector<16x32xf32>
      %17 = arith.addf %14, %16 : vector<16x32xf32>
      %18 = math.tanh %17 : vector<16x32xf32>
      %c0_15 = arith.constant 0 : index
      %c0_16 = arith.constant 0 : index
      %19 = vector.load %arg8[%c0_15, %c0_16] : memref<16x32xf32, #tpu.memory_space<vmem>>, vector<16x32xf32>
      tpu.vector_store %arg8[%c0_15, %c0_16], %18 {strides = array<i32>} : memref<16x32xf32, #tpu.memory_space<vmem>>, vector<16x32xf32>,
    } else {
    }
    %c0 = arith.constant 0 : index
    %c0_1 = arith.constant 0 : index
    %3 = vector.load %arg8[%c0, %c0_1] : memref<16x32xf32, #tpu.memory_space<vmem>>, vector<16x32xf32>
    %4 = arith.truncf %3 : vector<16x32xf32> to vector<16x32xbf16>
    %c0_2 = arith.constant 0 : index
    %c0_3 = arith.constant 0 : index
    %5 = vector.load %arg5[%c0_2, %c0_3] : memref<32x1024xbf16, #tpu.memory_space<vmem>>, vector<32x1024xbf16>
    %cst = arith.constant dense<0.000000e+00> : vector<16x1024xf32>
    %6 = tpu.matmul %4, %5, %cst {dimension_numbers = #tpu.dot_dimension_numbers<[1], [0], [0], [1], [0, 0, 1, 1], [], []>} : vector<16x32xbf16>, vector<32x1024xbf16>, vector<16x1024xf32> -> vector<16x1024xf32>
    %c0_4 = arith.constant 0 : index
    %c0_5 = arith.constant 0 : index
    %7 = vector.load %arg6[%c0_4, %c0_5] : memref<1x1024xf32, #tpu.memory_space<vmem>>, vector<1x1024xf32>
    %8 = vector.broadcast %7 : vector<1x1024xf32> to vector<16x1024xf32>
    %9 = arith.addf %6, %8 : vector<16x1024xf32>
    %10 = arith.truncf %9 : vector<16x1024xf32> to vector<16x1024xbf16>
    %c0_6 = arith.constant 0 : index
    %c0_7 = arith.constant 0 : index
    %11 = vector.load %arg7[%c0_6, %c0_7] : memref<16x1024xbf16, #tpu.memory_space<vmem>>, vector<16x1024xbf16>
    tpu.vector_store %arg7[%c0_6, %c0_7], %10 {strides = array<i32>} : memref<16x1024xbf16, #tpu.memory_space<vmem>>, vector<16x1024xbf16>,
    return
  }
  func.func @transform_0(%arg0: i32, %arg1: i32) -> (i32, i32) {
    %c0_i32 = arith.constant 0 : i32
    %c0_i32_0 = arith.constant 0 : i32
    return %arg0, %c0_i32 : i32, i32
  }
  func.func @transform_1(%arg0: i32, %arg1: i32) -> (i32, i32) {
    %c0_i32 = arith.constant 0 : i32
    %c0_i32_0 = arith.constant 0 : i32
    %c0_i32_1 = arith.constant 0 : i32
    return %c0_i32, %c0_i32_0 : i32, i32
  }
  func.func @transform_2(%arg0: i32, %arg1: i32) -> (i32, i32) {
    %c0_i32 = arith.constant 0 : i32
    %c0_i32_0 = arith.constant 0 : i32
    %c0_i32_1 = arith.constant 0 : i32
    return %c0_i32, %c0_i32_0 : i32, i32
  }
  func.func @transform_3(%arg0: i32, %arg1: i32) -> (i32, i32) {
    %c0_i32 = arith.constant 0 : i32
    %c0_i32_0 = arith.constant 0 : i32
    return %c0_i32, %arg1 : i32, i32
  }
  func.func @transform_4(%arg0: i32, %arg1: i32) -> (i32, i32) {
    %c0_i32 = arith.constant 0 : i32
    %c0_i32_0 = arith.constant 0 : i32
    return %c0_i32, %arg1 : i32, i32
  }
  func.func @transform_5(%arg0: i32, %arg1: i32) -> (i32, i32) {
    %c0_i32 = arith.constant 0 : i32
    return %arg0, %arg1 : i32, i32
  }
}

</mosaic_0001>

<bundles_post_ra>
// kernel: tpu_custom_call.1
= control target key start
LH: loop header
LB: loop body
LE: loop exit
PB: predicated region body
PF: predicated region fallthrough
CT: control target
= control target key end

     0   :  { %6 = vsyncpa [#allocation3], 0  ;;  %s287_s0 = inlined_call_operand.hbm [shape: f32[8,128], index: 0, kind: input, shape index: {}]   ;;  %s288_s1 = inlined_call_operand.hbm [shape: f32[8,128], index: 1, kind: output, shape index: {}]  }
   0x1   :  { %7 = vsyncpa [#allocation4], 0  ;;  %s270_s6 = smov 0  }
   0x2 LB: > { %s149_s7 = sadd.s32 4294967295, %s256_s6   ;;  %p150_p0 = scmp.ge.s32.totalorder %s256_s6, 1  ;;  %s256_s6 = sphi %s270_s6, %s13_s6  }
   0x3   : > { %p60_p1 = scmp.lt.s32.totalorder %s256_s6, 3  ;;  %s72_s10 = sshll.u32 %s287_s0, 4  ;;  %s73_s10 = int_to_ptr.hbm [resolvable:$true] %s72_s10 }
   0x4   : > { %p170_p3 = scmp.eq.s32.totalorder %s149_s7, 0  ;;  %s258_s11 = smov [#allocation2]  }
   0x5   : > { %p61_p2 = pnand %p150_p0, %p60_p1  ;;  %s74_s12 = sshll.u32 %s258_s11, 4  ;;  %s75_s12 = int_to_ptr.vmem [resolvable:$true] %s74_s12 }
   0x7   : > { %p166_p4 = pneg %p61_p2  ;;  %87 = sbr.rel (%p61_p2) target bundleno = 20 (0x14), region = 24 }
   0x9   : > { %p167_p5 = pnand %p170_p3, %p166_p4 }
   0xb   : > { %169 = dma.hbm_to_vmem [thread:$0]  (!%p167_p5), %s73_s10, 128, %s75_s12, [#allocation3]  }
   0xc   : > { %247 = dma.done.wait (%p170_p3), [#allocation3], 128  }
   0xd   : > { %249 = vsyncadd (%p170_p3), [#allocation3], 4294967168  ;;  %s259_s13 = smov [#allocation5]   ;;  %s109_s17 = sshll.u32 %s288_s1, 4  ;;  %v98_v0 = vld [vmem:[#allocation2] sm:$0xff]  ;;  %s110_s17 = int_to_ptr.hbm [resolvable:$true] %s109_s17 }
   0xe   : > { %s107_s14 = sshll.u32 %s259_s13, 4  ;;  %p172_p6 = scmp.eq.s32.totalorder %s149_s7, 1  ;;  %v99_v1 = vadd.f32 1.0, %v98_v0  ;;  %s108_s14 = int_to_ptr.vmem [resolvable:$true] %s107_s14 }
  0x10   : > { %100 = vst [vmem:[#allocation5] sm:$0xff] %v99_v1 }
  0x11   : > { %163 = dma.vmem_to_hbm [thread:$0]  (%p172_p6), %s108_s14, 128, %s110_s17, [#allocation4]  }
  0x12   : > { %251 = dma.done.wait (%p172_p6), [#allocation4], 128  }
  0x13   : > { %253 = vsyncadd (%p172_p6), [#allocation4], 4294967168 }
  0x14 PF: > { %s13_s6 = sadd.s32 1, %s256_s6  }
  0x15   : > { %p10_p7 = scmp.ge.s32.totalorder %s13_s6, 4  }
  0x17   :  { %12 = sbr.rel (!%p10_p7) target bundleno = 2 (0x2), region = 53 }
  0x1c   :  { %123 = vsyncpa [#allocation3], 1 }
  0x1d   :  { %125 = vsyncpa [#allocation3 + $0x1], 1 }
  0x1e   :  { %126 = vsyncpa [#allocation4], 1 }
  0x1f   :  { %128 = vsyncpa [#allocation4 + $0x1], 1 }

// kernel: bert_tensor_forward.8
= control target key start
LH: loop header
LB: loop body
LE: loop exit
PB: predicated region body
PF: predicated region fallthrough
CT: control target
= control target key end

     0   :  { %10 = vsyncpa [#allocation3], 0  ;;  %s352_s0 = inlined_call_operand.vmem [shape: bf16[2,32], index: 0, kind: input, shape index: {}]   ;;  %s353_s1 = inlined_call_operand.hbm [shape: bf16[32,32], index: 1, kind: input, shape index: {}]   ;;  %s354_s2 = inlined_call_operand.hbm [shape: f32[1,32], index: 2, kind: input, shape index: {}]   ;;  %s355_s3 = inlined_call_operand.vmem [shape: bf16[32,3], index: 3, kind: input, shape index: {}]   ;;  %s356_s4 = inlined_call_operand.hbm [shape: f32[1,3], index: 4, kind: input, shape index: {}]   ;;  %s357_s5 = inlined_call_operand.hbm [shape: f32[2,3], index: 5, kind: output, shape index: {}]  }
   0x1   :  { %11 = vsyncpa [#allocation6], 0  ;;  %s33_s20 = sshll.u32 %s354_s2, 4  ;;  %s34_s20 = int_to_ptr.hbm [resolvable:$true] %s33_s20 }
   0x2   :  { %12 = vsyncpa [#allocation4], 0  ;;  %s295_s21 = smov [#allocation5]   ;;  %s19_s25 = sshll.u32 %s353_s1, 4  ;;  %s20_s25 = int_to_ptr.hbm [resolvable:$true] %s19_s25 }
   0x3   :  { %s35_s22 = sshll.u32 %s295_s21, 4  ;;  %s296_s26 = smov [#allocation2]   ;;  %s36_s22 = int_to_ptr.vmem [resolvable:$true] %s35_s22 }
   0x4   :  { %38 = dma.hbm_to_vmem [thread:$0]  %s34_s20, 16, %s36_s22, [#allocation6]  }
   0x5   :  { %s21_s27 = sshll.u32 %s296_s26, 4  ;;  %s297_s28 = smov 64   ;;  %s22_s27 = int_to_ptr.vmem [resolvable:$true] %s21_s27 }
   0x6   :  { %s298_s29 = smov 4   ;;  %s46_s2 = sshll.u32 %s356_s4, 4  ;;  %s47_s2 = int_to_ptr.hbm [resolvable:$true] %s46_s2 }
   0x7   :  { %27 = dma.hbm_to_vmem [thread:$0]  %s20_s25, 256, %s22_s27, [#allocation3], %s297_s28, %s297_s28, %s298_s29  }
   0x8   :  { %s299_s7 = smov [#allocation7]  }
   0x9   :  { %s48_s8 = sshll.u32 %s299_s7, 4  ;;  %s49_s8 = int_to_ptr.vmem [resolvable:$true] %s48_s8 }
   0xa   :  { %51 = dma.hbm_to_vmem [thread:$0]  %s47_s2, 16, %s49_s8, [#allocation6]  }
   0xb   :  { %289 = dma.done.wait [#allocation3], 256  }
   0xc   :  { %290 = vsyncadd [#allocation3], 4294967040 }
   0xd   :  { %291 = dma.done.wait [#allocation6], 32  }
   0xe   :  { %292 = vsyncadd [#allocation6], 4294967264  ;;  %v180_v0 = vld [vmem:[#allocation2 + $0x8] sm:$0xff]  ;;  %v179_v1 = vld [vmem:[#allocation2] sm:$0xff]  ;;  %vm86_vm0 = vcmask 261120   ;;  %s150_s16 = sshll.u32 %s357_s5, 4  ;;  %s151_s16 = int_to_ptr.hbm [resolvable:$true] %s150_s16 }
   0xf   :  { %96 = vmatpush.bf16.msra.mxu0 %v180_v0  ;;  %v65_v2 = vld [vmem:[%s352_s0] sm:$0x1]  ;;  %v182_v3 = vld [vmem:[%s355_s3 + $0x8] sm:$0xff]  ;;  %v189_v5 = vld [vmem:[#allocation5] ss:$0 sm:$0xff]  ;;  %s300_s0 = smov [#allocation8]  }
  0x10   :  { %134 = vmatpush.bf16.msra.mxu1 %v182_v3  ;;  %v181_v4 = vld [vmem:[%s355_s3] sm:$0xff]  ;;  %v190_v11 = vld [vmem:[#allocation7] ss:$0 sm:$0xff]  ;;  %s148_s13 = sshll.u32 %s300_s0, 4  ;;  %vm141_vm1 = vcmask 17408   ;;  %s149_s13 = int_to_ptr.vmem [resolvable:$true] %s148_s13 }
  0x13   :  { %97 = vmatpush.bf16.msra.mxu0 %v179_v1 }
  0x14   :  { %135 = vmatpush.bf16.msra.mxu1 %v181_v4 }
  0x16   :  { %169 = vmatmul.msk.bf16.vlgmr.msra.gmra.mxu0 %vm86_vm0, %v65_v2 }
  0x93   :  { %v99_v6 = vpop.f32.mrf.mxu0 }
  0x94   :  { %v100_v7 = vadd.f32 %v189_v5, %v99_v6 }
  0x96   :  { %191 = vtanh.f32 %v100_v7 }
  0x9b   :  { %v101_v8 = vpop.f32.mrf.mxu0 }
  0x9c   :  { %v192_v9 = vpop.eup %191 }
  0x9d   :  { %v104_v10 = vpack.c.bf16 %v192_v9, %v192_v9 }
  0x9f   :  { %178 = vmatmul.msk.bf16.vlgmr.msra.gmra.mxu1 %vm86_vm0, %v104_v10 }
 0x11c   :  { %v137_v12 = vpop.f32.mrf.mxu1 }
 0x11d   :  { %v138_v13 = vadd.f32 %v190_v11, %v137_v12 }
 0x11f   :  { %142 = vst.msk [vmem:[#allocation8] sm:$0x3] %vm141_vm1, %v138_v13 }
 0x120   :  { %153 = dma.vmem_to_hbm [thread:$0]  %s149_s13, 32, %s151_s16, [#allocation4]  }
 0x124   :  { %v139_v14 = vpop.f32.mrf.mxu1 }
 0x125   :  { %293 = dma.done.wait [#allocation4], 32  }
 0x126   :  { %294 = vsyncadd [#allocation4], 4294967264 }
 0x127   :  { %158 = vsyncpa [#allocation3], 1 }
 0x128   :  { %159 = vsyncpa [#allocation6], 1 }
 0x129   :  { %160 = vsyncpa [#allocation4], 1 }

// kernel: bert_tensor_forward.5
= control target key start
LH: loop header
LB: loop body
LE: loop exit
PB: predicated region body
PF: predicated region fallthrough
CT: control target
= control target key end

     0   :  { %9 = vsyncpa [#allocation3], 0  ;;  %s725_s0 = inlined_call_operand.hbm [shape: f32[2,8,32], index: 0, kind: input, shape index: {}]   ;;  %s726_s1 = inlined_call_operand.vmem [shape: f32[8,32], index: 1, kind: input, shape index: {}]   ;;  %s727_s2 = inlined_call_operand.hbm [shape: f32[1,32], index: 2, kind: input, shape index: {}]   ;;  %s728_s3 = inlined_call_operand.hbm [shape: f32[1,32], index: 3, kind: input, shape index: {}]   ;;  %s729_s4 = inlined_call_operand.vmem [shape: bf16[2,8,32], index: 4, kind: output, shape index: {}]  }
   0x1   :  { %11 = vsyncpa [#allocation3 + $0x1], 0 }
   0x2   :  { %12 = vsyncpa [#allocation5], 0  ;;  %s614_s15 = smov 0   ;;  %s616_s16 = smov 0  }
   0x3   :  { %s618_s17 = smov 0   ;;  %s620_s18 = smov 0  }
   0x4 LB: > { %s633_s19 = sadd.s32 4294967295, %s584_s18   ;;  %p38_p0 = scmp.ne.s32.totalorder %s576_s16, %s572_s15  ;;  %s584_s18 = sphi %s620_s18, %s736_s18   ;;  %s580_s17 = sphi %s618_s17, %s735_s17   ;;  %s576_s16 = sphi %s616_s16, %s734_s16   ;;  %s572_s15 = sphi %s614_s15, %s733_s15  }
   0x5   : > { %p39_p1 = scmp.eq.s32.totalorder %s633_s19, 0  ;;  %p376_p2 = scmp.ge.s32.totalorder %s584_s18, 1 }
   0x6   : > { %p138_p3 = scmp.lt.s32.totalorder %s584_s18, 3  ;;  %s153_s23 = sshll.u32 %s727_s2, 4  ;;  %s154_s23 = int_to_ptr.hbm [resolvable:$true] %s153_s23 }
   0x7   : > { %p641_p4 = por %p39_p1, %p38_p0  ;;  %s586_s25 = smov [#allocation4]  }
   0x8   : > { %p648_p5 = pnand %p376_p2, %p138_p3  ;;  %s155_s26 = sshll.u32 %s586_s25, 4  ;;  %s156_s26 = int_to_ptr.vmem [resolvable:$true] %s155_s26 }
   0x9   : > { %s165_s29 = sshll.u32 %s728_s3, 4  ;;  %s587_s30 = smov [#allocation6]   ;;  %s166_s29 = int_to_ptr.hbm [resolvable:$true] %s165_s29 }
   0xa   : > { %p399_p6 = pneg %p648_p5  ;;  %s167_s5 = sshll.u32 %s587_s30, 4  ;;  %s168_s5 = int_to_ptr.vmem [resolvable:$true] %s167_s5 }
   0xb   : > { %s660_s6 = sadd.s32 1, %s584_s18   ;;  %s25_s7 = sadd.s32 1, %s580_s17 }
   0xc   : > { %p400_p7 = pnand %p399_p6, %p39_p1  ;;  %s22_s8 = ssub.s32 %s584_s18, %s660_s6 }
   0xd   : > { %p32_p8 = scmp.ne.s32.totalorder %s580_s17, %s576_s16  ;;  %p23_p9 = scmp.eq.s32.totalorder %s22_s8, 0 }
   0xe   : > { %402 = dma.hbm_to_vmem [thread:$0]  (!%p400_p7), %s154_s23, 16, %s156_s26, [#allocation5]  }
   0xf   : > { %405 = dma.hbm_to_vmem [thread:$0]  (!%p400_p7), %s166_s29, 16, %s168_s5, [#allocation5]  }
  0x10   : > { %p33_p10 = scmp.eq.s32.totalorder %s584_s18, 0  ;;  %s178_s9 = sand.u32 1, %s580_s17  }
  0x11   : > { %s670_s10 = scalar_select %p23_p9, %s580_s17, %s25_s7  }
  0x12   : > { %p34_p11 = por %p33_p10, %p32_p8  ;;  %p412_p12 = scmp.lt.s32.totalorder %s584_s18, 2 }
  0x13   : > { %s380_s11 = sshll.u32 %s178_s9, 3  ;;  %s381_s12 = sshll.u32 %s584_s18, 3 }
  0x14   : > { %s186_s15 = scalar_lea.hbm %s725_s0, %s381_s12  ;;  %s182_s22 = scalar_lea.vmem [#allocation2], %s380_s11 }
  0x15   : > { %s188_s21 = sshll.u32 %s186_s15, 4  ;;  %s190_s23 = sshll.u32 %s182_s22, 4  ;;  %s189_s21 = int_to_ptr.hbm [resolvable:$true] %s188_s21  ;;  %s191_s23 = int_to_ptr.vmem [resolvable:$true] %s190_s23 }
  0x16   : > { %p677_p13 = pnand %p412_p12, %p34_p11  ;;  %s179_s26 = scalar_lea.sflag [#allocation3], %s178_s9 }
  0x17   : > { %s516_s27 = sshra.s32 %s189_s21, 4  ;;  %s523_s30 = scalar_lea.hbm %s725_s0, 16  ;;  %s517_s27 = int_to_ptr.hbm [resolvable:$true] %s516_s27 }
  0x18   : > { %s518_s28 = scalar_lea.hbm %s517_s27, 8  ;;  %p520_p2 = pneg %p677_p13 }
  0x19   : > { %p519_p0 = scmp.ne.s32.totalorder %s517_s27, %s518_s28  ;;  %p524_p7 = scmp.lt.s32.totalorder %s517_s27, %s725_s0 }
  0x1a   : > { %p525_p8 = scmp.lt.s32.totalorder %s523_s30, %s518_s28 }
  0x1b   : > { %p521_p3 = pnand %p520_p2, %p519_p0 }
  0x1c   : > { %p526_p9 = por %p525_p8, %p524_p7 }
  0x1d   : > { %p522_p6 = pneg %p521_p3 }
  0x1f   : > { %p527_p10 = pnand %p526_p9, %p522_p6 }
  0x21   : > { %530 = shalt.err (!%p527_p10)
}
  0x22   : > { %409 = dma.hbm_to_vmem [thread:$0]  (!%p677_p13), %s189_s21, 128, %s191_s23, %s179_s26  }
  0x23   : > { %199 = sbr.rel (%p648_p5) target bundleno = 319 (0x13f), region = 36  ;;  %s201_s8 = sand.u32 (!%p648_p5), 1, %s576_s16  }
  0x24   : > { %s383_s9 = sshll.u32 (!%p648_p5), %s201_s8, 3  ;;  %s202_s11 = scalar_lea.sflag (!%p648_p5), [#allocation3], %s201_s8 }
  0x25   : > { %s205_s12 = scalar_lea.vmem (!%p648_p5), [#allocation2], %s383_s9 }
  0x28   : > { %563 = dma.done.wait (%p641_p4), %s202_s11, 128  }
  0x29   : > { %565 = vsyncadd (%p641_p4), %s202_s11, 4294967168 }
  0x2a   : > { %567 = dma.done.wait (%p39_p1), [#allocation5], 32  }
  0x2b   : > { %569 = vsyncadd (%p39_p1), [#allocation5], 4294967264  ;;  %v244_v0 = vld [vmem:[%s205_s12] sm:$0xff]  ;;  %vm250_vm0 = vcmask 261120   ;;  %v588_v5 = vmov 32.0   ;;  %p240_p1 = scmp.lt.s32.totalorder %s633_s19, 1 }
  0x2c   : > { %v246_v1 = vld [vmem:[%s726_s1] sm:$0xff]  ;;  %v245_v2 = vmul.f32 2.0, %v244_v0  ;;  %452 = vrcp.f32 %v588_v5  ;;  %v450_v26 = vld [vmem:[#allocation4] ss:$0 sm:$0xff]  ;;  %v451_v28 = vld [vmem:[#allocation6] ss:$0 sm:$0xff] }
  0x2d   : > { %s738_s19 = smov (!%p240_p1, %s633_s19), 1  ;;  %vm289_vm5 = vcmask 257024  }
  0x2e   : > { %v247_v3 = vadd.f32 %v246_v1, %v245_v2  ;;  %s386_s20 = sshll.u32 %s738_s19, 2 }
  0x2f   : > { %s243_s21 = scalar_lea.vmem %s729_s4, %s386_s20 }
  0x30   : > { %v251_v4 = vsel %vm250_vm0, %v247_v3, 0.0 }
  0x31   : > { %252 = vadd.xlane.f32.xlu0 %v251_v4 }
  0x32   : > { %v453_v6 = vpop.eup %452 }
  0x33   : > { %v255_v7 = vmul.f32 32.0, %v453_v6  ;;  %vm259_vm1 = vweird.f32 %v453_v6 }
  0x35   : > { %v256_v8 = vsub.f32 1.0, %v255_v7 }
  0x37   : > { %v257_v9 = vmul.f32 %v453_v6, %v256_v8 }
  0x39   : > { %v258_v10 = vadd.f32 %v453_v6, %v257_v9 }
  0x3b   : > { %v260_v11 = vsel %vm259_vm1, %v453_v6, %v258_v10 }
  0xa4   : > { %v253_v12 = vpop.xlane.xlu0 %252 }
  0xa5   : > { %v261_v13 = vmul.f32 %v260_v11, %v253_v12 }
  0xa7   : > { %v262_v14 = vsub.f32 %v247_v3, %v261_v13 }
  0xa9   : > { %v263_v15 = vmul.f32 %v262_v14, %v262_v14 }
  0xab   : > { %v264_v16 = vsel %vm250_vm0, %v263_v15, 0.0 }
  0xac   : > { %265 = vadd.xlane.f32.xlu0 %v264_v16 }
 0x11f   : > { %v266_v17 = vpop.xlane.xlu0 %265 }
 0x120   : > { %v267_v18 = vmul.f32 %v266_v17, %v260_v11 }
 0x122   : > { %v268_v19 = vadd.f32 1e-12, %v267_v18 }
 0x124   : > { %454 = vrsqrt.f32 %v268_v19  ;;  %vm275_vm3 = vweird.f32 %v268_v19 }
 0x12a   : > { %v455_v20 = vpop.eup %454 }
 0x12b   : > { %v270_v21 = vmul.f32 %v455_v20, %v268_v19  ;;  %vm276_vm2 = vweird.f32 %v455_v20 }
 0x12c   : > { %vm277_vm4 = vmor %vm275_vm3, %vm276_vm2 }
 0x12d   : > { %v271_v22 = vmul.f32 %v455_v20, %v270_v21 }
 0x12f   : > { %v272_v23 = vmul.f32 0.5, %v271_v22 }
 0x131   : > { %v273_v24 = vsub.f32 1.5, %v272_v23 }
 0x133   : > { %v274_v25 = vmul.f32 %v455_v20, %v273_v24 }
 0x135   : > { %v278_v27 = vsel %vm277_vm4, %v455_v20, %v274_v25 }
 0x136   : > { %v279_v29 = vmul.f32 %v278_v27, %v262_v14 }
 0x138   : > { %v283_v30 = vmul.f32 %v450_v26, %v279_v29 }
 0x13a   : > { %v287_v31 = vadd.f32 %v451_v28, %v283_v30 }
 0x13c   : > { %v288_v32 = vpack.c.bf16 %v287_v31, %v287_v31 }
 0x13e   : > { %290 = vst.msk [vmem:[%s243_s21] sm:$0xf] %vm289_vm5, %v288_v32 }
 0x13f PF: > { %p15_p4 = scmp.ge.s32.totalorder %s660_s6, 4   ;;  %s733_s15 = smov %s576_s16 }
 0x140   : > { %s734_s16 = smov %s580_s17  ;;  %s735_s17 = smov %s670_s10 }
 0x141   : > { %s736_s18 = smov %s660_s6  ;;  %17 = sbr.rel (!%p15_p4) target bundleno = 4 (0x4), region = 84 }
 0x146   :  { %310 = vsyncpa [#allocation3], 1 }
 0x147   :  { %312 = vsyncpa [#allocation3 + $0x1], 1 }
 0x148   :  { %313 = vsyncpa [#allocation5], 1 }

// kernel: bert_tensor_forward.9
= control target key start
LH: loop header
LB: loop body
LE: loop exit
PB: predicated region body
PF: predicated region fallthrough
CT: control target
= control target key end

     0   :  { %s1472_s0 = inlined_call_operand.vmem [shape: bf16[16,32], index: 0, kind: input, shape index: {}]   ;;  %s1473_s1 = inlined_call_operand.hbm [shape: bf16[32,32], index: 1, kind: input, shape index: {}]   ;;  %s1474_s2 = inlined_call_operand.hbm [shape: f32[1,32], index: 2, kind: input, shape index: {}]   ;;  %s1475_s3 = inlined_call_operand.hbm [shape: bf16[32,30720], index: 3, kind: input, shape index: {}]   ;;  %s1476_s4 = inlined_call_operand.hbm [shape: f32[1,30720], index: 4, kind: input, shape index: {}]   ;;  %s1477_s5 = inlined_call_operand.vmem [shape: bf16[16,30720], index: 5, kind: output, shape index: {}]  }
   0x1   :  { %1482 = sst [smem:[#allocation18_spill]] %s1473_s1 }
   0x2   :  { %1483 = sst [smem:[#allocation19_spill]] %s1475_s3 }
   0x3   :  { %1484 = sst [smem:[#allocation20_spill]] %s1477_s5 }
   0x4   :  { %10 = vsyncpa [#allocation4], 0 }
   0x5   :  { %11 = vsyncpa [#allocation6], 0  ;;  %s1258_s18 = smov 0   ;;  %s1260_s19 = smov 0  }
   0x6   :  { %s1262_s20 = smov 0   ;;  %s1264_s21 = smov 0  }
   0x7   :  { %s1266_s22 = smov 0   ;;  %s1268_s23 = smov 0  }
   0x8 LB: > { %1485 = sst [smem:[#allocation13_spill]] %s1207_s20  ;;  %s1287_s24 = sadd.s32 4294967295, %s1219_s23   ;;  %s1219_s23 = sphi %s1268_s23, %s17_s23   ;;  %s1215_s22 = sphi %s1266_s22, %s1507_s22   ;;  %s1211_s21 = sphi %s1264_s21, %s1506_s21   ;;  %s1207_s20 = sphi %s1262_s20, %s1502_s20   ;;  %s1203_s19 = sphi %s1260_s19, %s1505_s19   ;;  %s1199_s18 = sphi %s1258_s18, %s1504_s18  }
   0x9   : > { %1486 = sst [smem:[#allocation14_spill]] %s1219_s23  ;;  %s104_s25 = sadd.s32 1, %s1207_s20 }
   0xa   : > { %p111_p0 = scmp.ne.s32.totalorder %s1207_s20, %s1203_s19  ;;  %p112_p1 = scmp.eq.s32.totalorder %s1219_s23, 0 }
   0xb   : > { %p117_p2 = scmp.ne.s32.totalorder %s1203_s19, %s1199_s18  ;;  %p118_p3 = scmp.eq.s32.totalorder %s1287_s24, 0 }
   0xc   : > { %p1295_p4 = por %p112_p1, %p111_p0  ;;  %p169_p5 = scmp.eq.s32.totalorder %s1287_s24, 29 }
   0xd   : > { %p1302_p6 = por %p118_p3, %p117_p2  ;;  %p822_p7 = scmp.ge.s32.totalorder %s1219_s23, 1 }
   0xe   : > { %p1307_p8 = por %p169_p5, %p111_p0  ;;  %p182_p9 = scmp.lt.s32.totalorder %s1219_s23, 31 }
   0xf   : > { %s1491_s1 = sld [smem:[#allocation18_spill]]  ;;  %s1221_s8 = smov [#allocation3]  }
  0x10   : > { %s1489_s28 = scalar_select %p1307_p8, 1, 0 }
  0x11   : > { %p1315_p10 = pnand %p822_p7, %p182_p9  ;;  %s204_s9 = sshll.u32 %s1221_s8, 4  ;;  %s205_s9 = int_to_ptr.vmem [resolvable:$true] %s204_s9 }
  0x12   : > { %1490 = sst [smem:[#allocation15_spill]] %s1489_s28  ;;  %p978_p13 = scmp.lt.s32.totalorder %s1219_s23, 30 }
  0x13   : > { %p962_p11 = pneg %p1315_p10  ;;  %s1222_s11 = smov 64  }
  0x14   : > { %s1223_s12 = smov 4   ;;  %p1332_p0 = pnand %p978_p13, %p1295_p4 }
  0x15   : > { %s202_s6 = sshll.u32 %s1491_s1, 4  ;;  %p1323_p12 = pnand %p962_p11, %p118_p3  ;;  %s203_s6 = int_to_ptr.hbm [resolvable:$true] %s202_s6 }
  0x16   : > { %s26_s14 = sadd.s32 1, %s1215_s22  ;;  %s230_s15 = sand.u32 1, %s1219_s23  }
  0x17   : > { %965 = dma.hbm_to_vmem [thread:$0]  (!%p1323_p12), %s203_s6, 256, %s205_s9, [#allocation4], %s1222_s11, %s1222_s11, %s1223_s12  }
  0x18   : > { %p27_p1 = scmp.ge.s32.totalorder %s26_s14, 30  ;;  %s232_s16 = sand.u32 1, %s1207_s20  }
  0x19   : > { %s929_s17 = sshll.u32 %s1215_s22, 5  ;;  %s827_s29 = sshll.u32 %s232_s16, 7 }
  0x1a   : > { %s1509_s14 = smov (%p27_p1, %s26_s14), 0  ;;  %s1496_s3 = sld [smem:[#allocation19_spill]] }
  0x1b   : > { %1495 = sst [smem:[#allocation16_spill]] %s1509_s14  ;;  %s101_s18 = ssub.s32 %s1215_s22, %s1509_s14 }
  0x1c   : > { %p102_p2 = scmp.eq.s32.totalorder %s101_s18, 0  ;;  %s234_s6 = scalar_lea.vmem [#allocation7], %s827_s29 }
  0x1d   : > { %s242_s9 = sshll.u32 %s234_s6, 4  ;;  %s231_s1 = scalar_lea.sflag [#allocation4], %s230_s15  ;;  %s243_s9 = int_to_ptr.vmem [resolvable:$true] %s242_s9 }
  0x1e   : > { %s1350_s11 = scalar_select %p102_p2, %s1207_s20, %s104_s25  }
  0x1f   : > { %s1224_s23 = smov 15360   ;;  %s1225_s5 = smov 512  }
  0x20   : > { %s239_s26 = scalar_lea.hbm %s1496_s3, %s929_s17  ;;  %1497 = sst [smem:[#allocation17_spill]] %s1350_s11 }
  0x21   : > { %s240_s12 = sshll.u32 %s239_s26, 4  ;;  %s1226_s14 = smov 32   ;;  %s241_s12 = int_to_ptr.hbm [resolvable:$true] %s240_s12 }
  0x22   : > { %972 = dma.hbm_to_vmem [thread:$0]  (!%p1332_p0), %s241_s12, 2048, %s243_s9, %s231_s1, %s1224_s23, %s1225_s5, %s1226_s14  }
  0x23   : > { %s217_s17 = sshll.u32 %s1474_s2, 4  ;;  %s1227_s29 = smov [#allocation5]   ;;  %s218_s17 = int_to_ptr.hbm [resolvable:$true] %s217_s17 }
  0x24   : > { %s219_s8 = sshll.u32 %s1227_s29, 4  ;;  %s830_s25 = sshll.u32 %s232_s16, 3  ;;  %s220_s8 = int_to_ptr.vmem [resolvable:$true] %s219_s8 }
  0x25   : > { %968 = dma.hbm_to_vmem [thread:$0]  (!%p1323_p12), %s218_s17, 16, %s220_s8, [#allocation6]  }
  0x26   : > { %s831_s26 = sshll.u32 %s1215_s22, 3  ;;  %s256_s11 = scalar_lea.vmem [#allocation8], %s830_s25 }
  0x27   : > { %s260_s3 = scalar_lea.hbm %s1476_s4, %s831_s26  ;;  %s264_s20 = sshll.u32 %s256_s11, 4  ;;  %s265_s20 = int_to_ptr.vmem [resolvable:$true] %s264_s20 }
  0x28   : > { %s262_s28 = sshll.u32 %s260_s3, 4  ;;  %273 = sbr.rel (%p1315_p10) target bundleno = 395 (0x18b), region = 40  ;;  %s263_s28 = int_to_ptr.hbm [resolvable:$true] %s262_s28 }
  0x29   : > { %975 = dma.hbm_to_vmem [thread:$0]  (!%p1332_p0), %s263_s28, 128, %s265_s20, %s231_s1  }
  0x2d   : > { %1186 = dma.done.wait (%p118_p3), [#allocation4], 256  }
  0x2e   : > { %1188 = vsyncadd (%p118_p3), [#allocation4], 4294967040 }
  0x2f   : > { %1190 = dma.done.wait (%p118_p3), [#allocation6], 16  }
  0x30   : > { %1192 = vsyncadd (%p118_p3), [#allocation6], 4294967280  ;;  %s285_s3 = sand.u32 1, %s1287_s24   ;;  %s287_s1 = sand.u32 1, %s1203_s19  }
  0x31   : > { %s835_s5 = sshll.u32 %s287_s1, 7  ;;  %s286_s20 = scalar_lea.sflag [#allocation4], %s285_s3 }
  0x32   : > { %s1377_s23 = scalar_lea.vmem [#allocation7], %s835_s5 }
  0x33   : > { %1194 = dma.done.wait (%p1302_p6), %s286_s20, 2176  }
  0x34   : > { %1196 = vsyncadd (%p1302_p6), %s286_s20, 4294965120  ;;  %s836_s28 = sshll.u32 %s287_s1, 3  ;;  %s837_s7 = sshll.u32 %s287_s1, 6 }
  0x35   : > { %s1383_s10 = scalar_lea.vmem [#allocation8], %s836_s28  ;;  %s1385_s13 = scalar_lea.vmem [#allocation9], %s837_s7 }
  0x36   : > { %p838_p3 = scmp.ne.s32.totalorder %s1211_s21, 0 }
  0x38   : > { %350 = sbr.rel (%p838_p3) target bundleno = 213 (0xd5), region = 60 }
  0x3d   : > { %v932_v0 = vld [vmem:[#allocation3 + $0x8] sm:$0xff]  ;;  %v931_v1 = vld [vmem:[#allocation3] sm:$0xff]  ;;  %v930_v2 = vld [vmem:[%s1472_s0] sm:$0xff]  ;;  %vm378_vm0 = vcmask 261120  }
  0x3e   : > { %388 = vmatpush.bf16.msra.mxu0 %v932_v0  ;;  %v1036_v3 = vld [vmem:[#allocation5] ss:$0 sm:$0xff] }
  0x42   : > { %389 = vmatpush.bf16.msra.mxu0 %v931_v1 }
  0x45   : > { %851 = vmatmul.msk.bf16.vlgmr.msra.gmra.mxu0 %vm378_vm0, %v930_v2 }
  0xc2   : > { %v391_v4 = vpop.f32.mrf.mxu0 }
  0xc3   : > { %v392_v5 = vadd.f32 %v1036_v3, %v391_v4 }
  0xc5   : > { %1037 = vtanh.f32 %v392_v5 }
  0xca   : > { %v393_v6 = vpop.f32.mrf.mxu0 }
  0xcb   : > { %v1038_v7 = vpop.eup %1037  ;;  %v394_v8 = vadd.f32 %v1036_v3, %v393_v6 }
  0xcc   : > { %398 = vst.msk [vmem:[#allocation2] sm:$0xff] %vm378_vm0, %v1038_v7 }
  0xcd   : > { %1039 = vtanh.f32 %v394_v8 }
  0xd3   : > { %v1040_v9 = vpop.eup %1039 }
  0xd4   : > { %399 = vst.msk [vmem:[#allocation2 + $0x8] sm:$0xff] %vm378_vm0, %v1040_v9 }
  0xd5 PF: > { %v886_v10 = vld [vmem:[%s1377_s23 + $0x40] sm:$0xf]  ;;  %v941_v12 = vld [vmem:[%s1377_s23 + $0x44] sm:$0xf]  ;;  %v894_v15 = vld [vmem:[%s1377_s23 + $0x48] sm:$0xf] }
  0xd6   : > { %v945_v11 = vld [vmem:[%s1377_s23 + $0x5c] sm:$0xf0]  ;;  %v888_v14 = vld [vmem:[%s1377_s23 + $0x60] sm:$0xf0]  ;;  %v946_v16 = vld [vmem:[%s1377_s23 + $0x64] sm:$0xf0] }
  0xd7   : > { %v887_v13 = vor.u32 %v945_v11, %v886_v10  ;;  %v891_v17 = vor.u32 %v941_v12, %v888_v14  ;;  %v895_v18 = vor.u32 %v946_v16, %v894_v15  ;;  %v942_v19 = vld [vmem:[%s1377_s23 + $0x4c] sm:$0xf]  ;;  %v854_v21 = vld [vmem:[%s1377_s23] sm:$0xf]  ;;  %v933_v24 = vld [vmem:[%s1377_s23 + $0x4] sm:$0xf] }
  0xd8   : > { %v896_v20 = vld [vmem:[%s1377_s23 + $0x68] sm:$0xf0]  ;;  %v937_v23 = vld [vmem:[%s1377_s23 + $0x1c] sm:$0xf0]  ;;  %v856_v25 = vld [vmem:[%s1377_s23 + $0x20] sm:$0xf0] }
  0xd9   : > { %527 = vmatpush.bf16.msra.mxu0 %v887_v13  ;;  %v899_v22 = vor.u32 %v942_v19, %v896_v20  ;;  %541 = vmatpush.bf16.msra.mxu1 %v891_v17  ;;  %v855_v26 = vor.u32 %v937_v23, %v854_v21  ;;  %v859_v27 = vor.u32 %v933_v24, %v856_v25  ;;  %v862_v28 = vld [vmem:[%s1377_s23 + $0x8] sm:$0xf]  ;;  %v934_v30 = vld [vmem:[%s1377_s23 + $0xc] sm:$0xf]  ;;  %v400_v33 = vld [vmem:[#allocation2] sm:$0xff]  ;;  %vm517_vm1 = vcmask 261120  }
  0xda   : > { %555 = vmatpush.bf16.msra.mxu2 %v895_v18  ;;  %v938_v29 = vld [vmem:[%s1377_s23 + $0x24] sm:$0xf0]  ;;  %v864_v32 = vld [vmem:[%s1377_s23 + $0x28] sm:$0xf0]  ;;  %v910_v37 = vld [vmem:[%s1377_s23 + $0x58] sm:$0xf] }
  0xdb   : > { %569 = vmatpush.bf16.msra.mxu3 %v899_v22  ;;  %v863_v31 = vor.u32 %v938_v29, %v862_v28  ;;  %v401_v34 = vld [vmem:[#allocation2 + $0x8] sm:$0xff]  ;;  %v867_v35 = vor.u32 %v934_v30, %v864_v32  ;;  %v948_v38 = vld [vmem:[%s1377_s23 + $0x74] sm:$0xf0]  ;;  %v944_v39 = vld [vmem:[%s1377_s23 + $0x5c] sm:$0xf]  ;;  %s949_s16 = sshll.u32 (%p1307_p8), %s1211_s21, 5 }
  0xdc   : > { %v402_v36 = vpack.c.bf16 %v401_v34, %v400_v33  ;;  %v911_v40 = vor.u32 %v948_v38, %v910_v37  ;;  %v912_v41 = vld [vmem:[%s1377_s23 + $0x78] sm:$0xf0]  ;;  %v902_v42 = vld [vmem:[%s1377_s23 + $0x50] sm:$0xf]  ;;  %v943_v46 = vld [vmem:[%s1377_s23 + $0x54] sm:$0xf] }
  0xdd   : > { %528 = vmatpush.bf16.msra.mxu0 %v855_v26  ;;  %v947_v43 = vld [vmem:[%s1377_s23 + $0x6c] sm:$0xf0]  ;;  %542 = vmatpush.bf16.msra.mxu1 %v859_v27  ;;  %v915_v44 = vor.u32 %v944_v39, %v912_v41  ;;  %v904_v47 = vld [vmem:[%s1377_s23 + $0x70] sm:$0xf0]  ;;  %v878_v48 = vld [vmem:[%s1377_s23 + $0x18] sm:$0xf] }
  0xde   : > { %556 = vmatpush.bf16.msra.mxu2 %v863_v31  ;;  %v903_v45 = vor.u32 %v947_v43, %v902_v42  ;;  %v907_v49 = vor.u32 %v943_v46, %v904_v47  ;;  %v940_v50 = vld [vmem:[%s1377_s23 + $0x34] sm:$0xf0]  ;;  %v936_v51 = vld [vmem:[%s1377_s23 + $0x1c] sm:$0xf]  ;;  %v870_v55 = vld [vmem:[%s1377_s23 + $0x10] sm:$0xf] }
  0xdf   : > { %570 = vmatpush.bf16.msra.mxu3 %v867_v35  ;;  %v880_v52 = vld [vmem:[%s1377_s23 + $0x38] sm:$0xf0]  ;;  %v879_v53 = vor.u32 %v940_v50, %v878_v48  ;;  %v939_v56 = vld [vmem:[%s1377_s23 + $0x2c] sm:$0xf0]  ;;  %v935_v57 = vld [vmem:[%s1377_s23 + $0x14] sm:$0xf] }
  0xe0   : > { %916 = vmatmul.msk.bf16.vlgmr.msra.gmra.mxu0 %vm517_vm1, %v402_v36  ;;  %v883_v54 = vor.u32 %v936_v51, %v880_v52  ;;  %917 = vmatmul.msk.bf16.vlgmr.msra.gmra.mxu1 %vm517_vm1, %v402_v36  ;;  %v872_v58 = vld [vmem:[%s1377_s23 + $0x30] sm:$0xf0]  ;;  %v871_v59 = vor.u32 %v939_v56, %v870_v55  ;;  %v419_v61 = vld [vmem:[%s1383_s10] sm:$0xff]  ;;  %s1499_s12 = sld [smem:[#allocation20_spill]] (%p1307_p8) }
  0xe1   : > { %918 = vmatmul.msk.bf16.vlgmr.msra.gmra.mxu2 %vm517_vm1, %v402_v36  ;;  %583 = vmatpush.bf16.msrb.mxu0 %v903_v45  ;;  %v875_v60 = vor.u32 %v935_v57, %v872_v58  ;;  %v421_v62 = vperm.slane %v419_v61, 0  ;;  %v422_v63 = vperm.slane %v419_v61, 1  ;;  %v423_v5 = vperm.slane %v419_v61, 2 }
  0xe2   : > { %611 = vmatpush.bf16.msrb.mxu2 %v911_v40  ;;  %919 = vmatmul.msk.bf16.vlgmr.msra.gmra.mxu3 %vm517_vm1, %v402_v36  ;;  %v424_v6 = vperm.slane %v419_v61, 3  ;;  %v425_v17 = vperm.slane %v419_v61, 4  ;;  %v426_v18 = vperm.slane %v419_v61, 5  ;;  %v427_v29 = vperm.slane %v419_v61, 6 }
  0xe3   : > { %625 = vmatpush.bf16.msrb.mxu3 %v915_v44  ;;  %597 = vmatpush.bf16.msrb.mxu1 %v907_v49  ;;  %v428_v30 = vperm.slane %v419_v61, 7 }
  0xe5   : > { %584 = vmatpush.bf16.msrb.mxu0 %v871_v59 }
  0xe6   : > { %612 = vmatpush.bf16.msrb.mxu2 %v879_v53  ;;  %s661_s18 = scalar_lea.vmem (%p1307_p8), %s1499_s12, %s949_s16 }
  0xe7   : > { %626 = vmatpush.bf16.msrb.mxu3 %v883_v54  ;;  %598 = vmatpush.bf16.msrb.mxu1 %v875_v60 }
  0xf0   : > { %920 = vmatmul.msk.bf16.vlgmr.msrb.gmra.mxu0 %vm517_vm1, %v402_v36  ;;  %921 = vmatmul.msk.bf16.vlgmr.msrb.gmra.mxu1 %vm517_vm1, %v402_v36 }
  0xf1   : > { %922 = vmatmul.msk.bf16.vlgmr.msrb.gmra.mxu2 %vm517_vm1, %v402_v36 }
  0xf2   : > { %923 = vmatmul.msk.bf16.vlgmr.msrb.gmra.mxu3 %vm517_vm1, %v402_v36 }
 0x15d   : > { %v530_v0 = vpop.f32.mrf.mxu0  ;;  %v544_v2 = vpop.f32.mrf.mxu1 }
 0x15e   : > { %v531_v1 = vadd.f32 %v530_v0, %v421_v62  ;;  %v545_v3 = vadd.f32 %v544_v2, %v422_v63 }
 0x160   : > { %v633_v4 = vpack.c.bf16 %v545_v3, %v531_v1 }
 0x162   : > { %641 = vst [vmem:[%s1385_s13] sm:$0xff] %v633_v4 }
 0x164   : > { %v558_v7 = vpop.f32.mrf.mxu2 }
 0x165   : > { %v559_v8 = vadd.f32 %v558_v7, %v423_v5  ;;  %v572_v9 = vpop.f32.mrf.mxu3  ;;  %v532_v10 = vpop.f32.mrf.mxu0 }
 0x166   : > { %v573_v11 = vadd.f32 %v572_v9, %v424_v6  ;;  %v533_v12 = vadd.f32 %v532_v10, %v421_v62  ;;  %v546_v13 = vpop.f32.mrf.mxu1 }
 0x167   : > { %v547_v14 = vadd.f32 %v546_v13, %v422_v63 }
 0x168   : > { %v634_v15 = vpack.c.bf16 %v573_v11, %v559_v8 }
 0x169   : > { %v637_v16 = vpack.c.bf16 %v547_v14, %v533_v12  ;;  %v674_v46 = vld [vmem:[%s1385_s13] sm:$0xff] (%p1307_p8) }
 0x16a   : > { %642 = vst [vmem:[%s1385_s13 + $0x8] sm:$0xff] %v634_v15 }
 0x16b   : > { %645 = vst [vmem:[%s1385_s13 + $0x20] sm:$0xff] %v637_v16 }
 0x16c   : > { %v560_v19 = vpop.f32.mrf.mxu2  ;;  %675 = vst [vmem:[%s661_s18] sm:$0xff] (%p1307_p8), %v674_v46 }
 0x16d   : > { %v561_v20 = vadd.f32 %v560_v19, %v423_v5  ;;  %v574_v21 = vpop.f32.mrf.mxu3  ;;  %v586_v22 = vpop.f32.mrf.mxu0 }
 0x16e   : > { %v575_v23 = vadd.f32 %v574_v21, %v424_v6  ;;  %v587_v24 = vadd.f32 %v586_v22, %v425_v17  ;;  %v600_v25 = vpop.f32.mrf.mxu1 }
 0x16f   : > { %v601_v26 = vadd.f32 %v600_v25, %v426_v18 }
 0x170   : > { %v638_v27 = vpack.c.bf16 %v575_v23, %v561_v20 }
 0x171   : > { %v635_v28 = vpack.c.bf16 %v601_v26, %v587_v24  ;;  %v676_v47 = vld [vmem:[%s1385_s13 + $0x8] sm:$0xff] (%p1307_p8) }
 0x172   : > { %646 = vst [vmem:[%s1385_s13 + $0x28] sm:$0xff] %v638_v27  ;;  %v682_v50 = vld [vmem:[%s1385_s13 + $0x20] sm:$0xff] (%p1307_p8) }
 0x173   : > { %643 = vst [vmem:[%s1385_s13 + $0x10] sm:$0xff] %v635_v28 }
 0x174   : > { %v614_v31 = vpop.f32.mrf.mxu2  ;;  %677 = vst [vmem:[%s661_s18 + $0x8] sm:$0xff] (%p1307_p8), %v676_v47 }
 0x175   : > { %v615_v32 = vadd.f32 %v614_v31, %v427_v29  ;;  %v628_v33 = vpop.f32.mrf.mxu3  ;;  %v588_v34 = vpop.f32.mrf.mxu0  ;;  %683 = vst [vmem:[%s661_s18 + $0x3c0] sm:$0xff] (%p1307_p8), %v682_v50 }
 0x176   : > { %v629_v35 = vadd.f32 %v628_v33, %v428_v30  ;;  %v589_v36 = vadd.f32 %v588_v34, %v425_v17  ;;  %v602_v37 = vpop.f32.mrf.mxu1 }
 0x177   : > { %v603_v38 = vadd.f32 %v602_v37, %v426_v18 }
 0x178   : > { %v636_v39 = vpack.c.bf16 %v629_v35, %v615_v32 }
 0x179   : > { %v639_v40 = vpack.c.bf16 %v603_v38, %v589_v36  ;;  %v684_v51 = vld [vmem:[%s1385_s13 + $0x28] sm:$0xff] (%p1307_p8) }
 0x17a   : > { %644 = vst [vmem:[%s1385_s13 + $0x18] sm:$0xff] %v636_v39  ;;  %v678_v48 = vld [vmem:[%s1385_s13 + $0x10] sm:$0xff] (%p1307_p8) }
 0x17b   : > { %647 = vst [vmem:[%s1385_s13 + $0x30] sm:$0xff] %v639_v40 }
 0x17c   : > { %v616_v41 = vpop.f32.mrf.mxu2  ;;  %679 = vst [vmem:[%s661_s18 + $0x10] sm:$0xff] (%p1307_p8), %v678_v48 }
 0x17d   : > { %v617_v42 = vadd.f32 %v616_v41, %v427_v29  ;;  %v630_v43 = vpop.f32.mrf.mxu3  ;;  %685 = vst [vmem:[%s661_s18 + $0x3c8] sm:$0xff] (%p1307_p8), %v684_v51 }
 0x17e   : > { %v631_v44 = vadd.f32 %v630_v43, %v428_v30  ;;  %655 = sbr.rel (!%p1307_p8) target bundleno = 395 (0x18b), region = 64 }
 0x180   : > { %v640_v45 = vpack.c.bf16 %v631_v44, %v617_v42 }
 0x181   : > { %v680_v49 = vld [vmem:[%s1385_s13 + $0x18] sm:$0xff] (%p1307_p8) }
 0x182   : > { %648 = vst [vmem:[%s1385_s13 + $0x38] sm:$0xff] %v640_v45  ;;  %v686_v52 = vld [vmem:[%s1385_s13 + $0x30] sm:$0xff] (%p1307_p8) }
 0x183   : > { %681 = vst [vmem:[%s661_s18 + $0x18] sm:$0xff] %v680_v49 }
 0x184   : > { %687 = vst [vmem:[%s661_s18 + $0x3d0] sm:$0xff] %v686_v52 }
 0x189   : > { %v688_v53 = vld [vmem:[%s1385_s13 + $0x38] sm:$0xff] }
 0x18a   : > { %689 = vst [vmem:[%s661_s18 + $0x3d8] sm:$0xff] %v688_v53 }
 0x18b PF: > { %s1500_s21 = sld [smem:[#allocation14_spill]]  ;;  %s1504_s18 = smov %s1203_s19 }
 0x18c   : > { %s1501_s30 = sld [smem:[#allocation13_spill]] }
 0x18d   : > { %s1502_s20 = sld [smem:[#allocation17_spill]] }
 0x18e   : > { %s1503_s17 = sld [smem:[#allocation16_spill]] }
 0x191   : > { %s17_s23 = sadd.s32 1, %s1500_s21   ;;  %s1506_s21 = smov %s1215_s22 }
 0x192   : > { %p14_p4 = scmp.ge.s32.totalorder %s17_s23, 32   ;;  %s1505_s19 = smov %s1501_s30 }
 0x194   : > { %s1507_s22 = smov %s1503_s17  ;;  %16 = sbr.rel (!%p14_p4) target bundleno = 8 (0x8), region = 128 }
 0x199   :  { %705 = vsyncpa [#allocation4], 1 }
 0x19a   :  { %707 = vsyncpa [#allocation4 + $0x1], 1 }
 0x19b   :  { %708 = vsyncpa [#allocation6], 1 }

// kernel: bert_tensor_forward.6
= control target key start
LH: loop header
LB: loop body
LE: loop exit
PB: predicated region body
PF: predicated region fallthrough
CT: control target
= control target key end

     0   :  { %s2157_s0 = inlined_call_operand.vmem [shape: bf16[2,8,32], index: 0, kind: input, shape index: {}]   ;;  %s2158_s1 = inlined_call_operand.hbm [shape: bf16[32,96], index: 1, kind: input, shape index: {}]   ;;  %s2159_s2 = inlined_call_operand.hbm [shape: f32[1,96], index: 2, kind: input, shape index: {}]   ;;  %s2160_s3 = inlined_call_operand.hbm [shape: bf16[32,32], index: 3, kind: input, shape index: {}]   ;;  %s2161_s4 = inlined_call_operand.hbm [shape: f32[1,32], index: 4, kind: input, shape index: {}]   ;;  %s2162_s5 = inlined_call_operand.hbm [shape: f32[1,32], index: 5, kind: input, shape index: {}]   ;;  %s2163_s6 = inlined_call_operand.hbm [shape: f32[1,32], index: 6, kind: input, shape index: {}]   ;;  %s2164_s7 = inlined_call_operand.hbm [shape: bf16[32,64], index: 7, kind: input, shape index: {}]   ;;  %s2165_s8 = inlined_call_operand.hbm [shape: f32[1,64], index: 8, kind: input, shape index: {}]   ;;  %s2166_s9 = inlined_call_operand.vmem [shape: bf16[64,32], index: 9, kind: input, shape index: {}]   ;;  %s2167_s10 = inlined_call_operand.hbm [shape: f32[1,32], index: 10, kind: input, shape index: {}]   ;;  %s2168_s11 = inlined_call_operand.hbm [shape: f32[1,32], index: 11, kind: input, shape index: {}]   ;;  %s2169_s12 = inlined_call_operand.hbm [shape: f32[1,32], index: 12, kind: input, shape index: {}]   ;;  %s2170_s13 = inlined_call_operand.vmem [shape: bf16[2,8,32], index: 13, kind: output, shape index: {}]  }
   0x1   :  { %2171 = sst [smem:[#allocation25_spill]] %s2159_s2 }
   0x2   :  { %2172 = sst [smem:[#allocation26_spill]] %s2161_s4 }
   0x3   :  { %18 = vsyncpa [#allocation3], 0 }
   0x4   :  { %19 = vsyncpa [#allocation5], 0 }
   0x5   :  { %20 = vsyncpa [#allocation8], 0 }
   0x6   :  { %21 = vsyncpa [#allocation11], 0 }
   0x7   :  { %22 = vsyncpa [#allocation14], 0 }
   0x8   :  { %23 = vsyncpa [#allocation17], 0  ;;  %s1973_s25 = smov 0  }
   0x9 LB: > { %s2173_s2 = sld [smem:[#allocation25_spill]]  ;;  %s1982_s29 = sadd.s32 4294967295, %s1873_s25   ;;  %s1873_s25 = sphi %s1973_s25, %s29_s25  }
   0xa   : > { %p1256_p0 = scmp.ge.s32.totalorder %s1873_s25, 1  ;;  %p338_p1 = scmp.lt.s32.totalorder %s1873_s25, 3 }
   0xb   : > { %p1425_p2 = scmp.eq.s32.totalorder %s1982_s29, 0  ;;  %s1875_s14 = smov [#allocation4]  }
   0xc   : > { %p1987_p3 = pnand %p1256_p0, %p338_p1  ;;  %s366_s15 = sshll.u32 %s1875_s14, 4  ;;  %s367_s15 = int_to_ptr.vmem [resolvable:$true] %s366_s15 }
   0xd   : > { %s2175_s4 = sld [smem:[#allocation26_spill]]  ;;  %s414_s21 = sshll.u32 %s2163_s6, 4  ;;  %s415_s21 = int_to_ptr.hbm [resolvable:$true] %s414_s21 }
   0xe   : > { %p1391_p4 = pneg %p1987_p3  ;;  %s1876_s23 = smov [#allocation7]  }
   0xf   : > { %s364_s28 = sshll.u32 %s2173_s2, 4  ;;  %s392_s24 = sshll.u32 %s1876_s23, 4  ;;  %s365_s28 = int_to_ptr.hbm [resolvable:$true] %s364_s28  ;;  %s393_s24 = int_to_ptr.vmem [resolvable:$true] %s392_s24 }
  0x10   : > { %p2001_p5 = pnand %p1425_p2, %p1391_p4  ;;  %s1877_s26 = smov [#allocation10]  }
  0x11   : > { %s416_s27 = sshll.u32 %s1877_s26, 4  ;;  %s440_s17 = sshll.u32 %s2165_s8, 4  ;;  %s417_s27 = int_to_ptr.vmem [resolvable:$true] %s416_s27  ;;  %s441_s17 = int_to_ptr.hbm [resolvable:$true] %s440_s17 }
  0x12   : > { %1397 = dma.hbm_to_vmem [thread:$0]  (!%p2001_p5), %s365_s28, 16, %s367_s15, [#allocation5]  }
  0x13   : > { %s390_s18 = sshll.u32 %s2175_s4, 4  ;;  %s467_s23 = sshll.u32 %s2168_s11, 4  ;;  %s391_s18 = int_to_ptr.hbm [resolvable:$true] %s390_s18  ;;  %s468_s23 = int_to_ptr.hbm [resolvable:$true] %s467_s23 }
  0x14   : > { %1403 = dma.hbm_to_vmem [thread:$0]  (!%p2001_p5), %s391_s18, 16, %s393_s24, [#allocation8]  }
  0x15   : > { %1409 = dma.hbm_to_vmem [thread:$0]  (!%p2001_p5), %s415_s21, 16, %s417_s27, [#allocation11]  }
  0x16   : > { %s1878_s2 = smov [#allocation13]   ;;  %s1879_s28 = smov [#allocation16]  }
  0x17   : > { %s442_s4 = sshll.u32 %s1878_s2, 4  ;;  %s469_s15 = sshll.u32 %s1879_s28, 4  ;;  %s443_s4 = int_to_ptr.vmem [resolvable:$true] %s442_s4  ;;  %s470_s15 = int_to_ptr.vmem [resolvable:$true] %s469_s15 }
  0x18   : > { %1415 = dma.hbm_to_vmem [thread:$0]  (!%p2001_p5), %s441_s17, 16, %s443_s4, [#allocation14]  }
  0x19   : > { %s349_s26 = sshll.u32 %s2158_s1, 4  ;;  %s1880_s21 = smov [#allocation2]   ;;  %s350_s26 = int_to_ptr.hbm [resolvable:$true] %s349_s26 }
  0x1a   : > { %1421 = dma.hbm_to_vmem [thread:$0]  (!%p2001_p5), %s468_s23, 16, %s470_s15, [#allocation17]  }
  0x1b   : > { %s351_s27 = sshll.u32 %s1880_s21, 4  ;;  %s375_s16 = sshll.u32 %s2160_s3, 4  ;;  %s352_s27 = int_to_ptr.vmem [resolvable:$true] %s351_s27  ;;  %s376_s16 = int_to_ptr.hbm [resolvable:$true] %s375_s16 }
  0x1c   : > { %s1881_s4 = smov 64   ;;  %s1882_s17 = smov 4  }
  0x1d   : > { %1394 = dma.hbm_to_vmem [thread:$0]  (!%p2001_p5), %s350_s26, 256, %s352_s27, [#allocation3], %s1881_s4, %s1881_s4, %s1882_s17  }
  0x1e   : > { %s1883_s19 = smov [#allocation6]   ;;  %s402_s23 = sshll.u32 %s2162_s5, 4  ;;  %s403_s23 = int_to_ptr.hbm [resolvable:$true] %s402_s23 }
  0x1f   : > { %s377_s20 = sshll.u32 %s1883_s19, 4  ;;  %s425_s21 = sshll.u32 %s2164_s7, 4  ;;  %s378_s20 = int_to_ptr.vmem [resolvable:$true] %s377_s20  ;;  %s426_s21 = int_to_ptr.hbm [resolvable:$true] %s425_s21 }
  0x20   : > { %1400 = dma.hbm_to_vmem [thread:$0]  (!%p2001_p5), %s376_s16, 256, %s378_s20, [#allocation5], %s1881_s4, %s1881_s4, %s1882_s17  }
  0x21   : > { %s1884_s2 = smov [#allocation9]   ;;  %s1885_s26 = smov [#allocation12]  }
  0x22   : > { %s404_s14 = sshll.u32 %s1884_s2, 4  ;;  %s427_s27 = sshll.u32 %s1885_s26, 4  ;;  %s405_s14 = int_to_ptr.vmem [resolvable:$true] %s404_s14  ;;  %s428_s27 = int_to_ptr.vmem [resolvable:$true] %s427_s27 }
  0x23   : > { %1406 = dma.hbm_to_vmem [thread:$0]  (!%p2001_p5), %s403_s23, 16, %s405_s14, [#allocation8]  }
  0x24   : > { %s455_s18 = sshll.u32 %s2167_s10, 4  ;;  %s479_s15 = sshll.u32 %s2169_s12, 4  ;;  %s456_s18 = int_to_ptr.hbm [resolvable:$true] %s455_s18  ;;  %s480_s15 = int_to_ptr.hbm [resolvable:$true] %s479_s15 }
  0x25   : > { %1412 = dma.hbm_to_vmem [thread:$0]  (!%p2001_p5), %s426_s21, 256, %s428_s27, [#allocation11], %s1881_s4, %s1881_s4, %s1882_s17  }
  0x26   : > { %s1886_s24 = smov [#allocation15]   ;;  %s1887_s23 = smov [#allocation18]  }
  0x27   : > { %s457_s2 = sshll.u32 %s1886_s24, 4  ;;  %s481_s14 = sshll.u32 %s1887_s23, 4  ;;  %s458_s2 = int_to_ptr.vmem [resolvable:$true] %s457_s2  ;;  %s482_s14 = int_to_ptr.vmem [resolvable:$true] %s481_s14 }
  0x28   : > { %1418 = dma.hbm_to_vmem [thread:$0]  (!%p2001_p5), %s456_s18, 16, %s458_s2, [#allocation14]  }
  0x29   : > { %1424 = dma.hbm_to_vmem [thread:$0]  (!%p2001_p5), %s480_s15, 16, %s482_s14, [#allocation17]  }
  0x2a   : > { %501 = sbr.rel (%p1987_p3) target bundleno = 1939 (0x793), region = 72 }
  0x2f   : > { %1848 = dma.done.wait (%p1425_p2), [#allocation3], 256  }
  0x30   : > { %1850 = vsyncadd (%p1425_p2), [#allocation3], 4294967040 }
  0x31   : > { %1852 = dma.done.wait (%p1425_p2), [#allocation5], 272  }
  0x32   : > { %1854 = vsyncadd (%p1425_p2), [#allocation5], 4294967024 }
  0x33   : > { %1856 = dma.done.wait (%p1425_p2), [#allocation8], 32  }
  0x34   : > { %1858 = vsyncadd (%p1425_p2), [#allocation8], 4294967264 }
  0x35   : > { %1860 = dma.done.wait (%p1425_p2), [#allocation11], 272  }
  0x36   : > { %1862 = vsyncadd (%p1425_p2), [#allocation11], 4294967024 }
  0x37   : > { %1864 = dma.done.wait (%p1425_p2), [#allocation14], 32  }
  0x38   : > { %1866 = vsyncadd (%p1425_p2), [#allocation14], 4294967264 }
  0x39   : > { %1868 = dma.done.wait (%p1425_p2), [#allocation17], 32  }
  0x3a   : > { %1870 = vsyncadd (%p1425_p2), [#allocation17], 4294967264  ;;  %p594_p6 = scmp.lt.s32.totalorder %s1982_s29, 1  ;;  %v1338_v0 = vld [vmem:[#allocation2 + $0x8] sm:$0xff]  ;;  %v1337_v1 = vld [vmem:[#allocation2] sm:$0xff]  ;;  %vm625_vm0 = vcmask 261120  }
  0x3b   : > { %635 = vmatpush.bf16.msra.mxu0 %v1338_v0  ;;  %v1483_v3 = vld [vmem:[#allocation4] ss:$0 sm:$0xff]  ;;  %s1888_s21 = smov 104   ;;  %s1889_s26 = smov 120   ;;  %vm646_vm1 = vcmask 64512   ;;  %vm684_vm2 = vcmask 1043456  }
  0x3c   : > { %s2178_s29 = smov (!%p594_p6, %s1982_s29), 1  ;;  %s1890_s27 = smov 96   ;;  %vm885_vm3 = vcmask 130048   ;;  %vm887_vm4 = vcmask 195584   ;;  %vm1041_vm9 = vcmask 523264   ;;  %vm1092_vm13 = vcmask 257024  }
  0x3d   : > { %s1281_s30 = sshll.u32 %s2178_s29, 2  ;;  %s1891_s19 = smov 80  }
  0x3e   : > { %s597_s17 = scalar_lea.vmem %s2157_s0, %s1281_s30  ;;  %s1892_s28 = smov 72  }
  0x3f   : > { %636 = vmatpush.bf16.msra.mxu0 %v1337_v1  ;;  %v2087_v2 = vld [vmem:[%s597_s17] sm:$0xf]  ;;  %s1893_s18 = smov 88   ;;  %s1894_s16 = smov 112  }
  0x40   : > { %s1895_s20 = smov 64   ;;  %s1896_s15 = smov 40  }
  0x41   : > { %s1897_s24 = smov 56   ;;  %s1898_s2 = smov 48  }
  0x42   : > { %1291 = vmatmul.msk.bf16.vlgmr.msra.gmra.mxu0 %vm625_vm0, %v2087_v2  ;;  %s1899_s23 = smov 8   ;;  %s1900_s14 = smov 16  }
  0x43   : > { %s1901_s22 = smov 24  }
  0xbf   : > { %v638_v4 = vpop.f32.mrf.mxu0 }
  0xc0   : > { %v639_v5 = vadd.f32 %v1483_v3, %v638_v4 }
  0xc2   : > { %v2091_v6 = vpack.c.bf16 %v639_v5, %v639_v5 }
  0xc4   : > { %815 = vrot.lane.b32.xlu2 %v2091_v6, %s1888_s21  ;;  %701 = vrot.lane.b32.xlu1 %v2091_v6, %s1889_s26 }
  0xc5   : > { %644 = vrot.lane.b32.xlu0 %v2091_v6, %s1890_s27 }
  0xc7   : > { %v640_v7 = vpop.f32.mrf.mxu0 }
  0xcc   : > { %760 = vrot.lane.b32.xlu2 %v2091_v6, %s1891_s19  ;;  %817 = vrot.lane.b32.xlu1 %v2091_v6, %s1892_s28 }
  0xcd   : > { %703 = vrot.lane.b32.xlu0 %v2091_v6, %s1893_s18 }
  0xd5   : > { %758 = vrot.lane.b32.xlu0 %v2091_v6, %s1894_s16 }
 0x11e   : > { %v816_v8 = vpop.permute.xlu2 %815 }
 0x126   : > { %v761_v9 = vpop.permute.xlu2 %760 }
 0x127   : > { %v766_v10 = vsel %vm646_vm1, %v761_v9, 0 }
 0x128   : > { %775 = vmatpush.bf16.xpose.msrb.mxu0 %v766_v10 }
 0x136   : > { %v702_v11 = vpop.permute.xlu1 %701 }
 0x137   : > { %v645_v12 = vpop.permute.xlu0 %644 }
 0x138   : > { %v651_v13 = vsel %vm646_vm1, %v645_v12, 0 }
 0x139   : > { %660 = vmatpush.bf16.xpose.msra.mxu1 %v651_v13 }
 0x13e   : > { %v818_v14 = vpop.permute.xlu1 %817 }
 0x13f   : > { %v704_v15 = vpop.permute.xlu0 %703  ;;  %v823_v16 = vsel %vm646_vm1, %v818_v14, 0 }
 0x140   : > { %1292 = vmatmul.msk.bf16.vlgmr.msra.gmra.mxu1 %vm646_vm1, %v2091_v6  ;;  %v709_v17 = vsel %vm646_vm1, %v704_v15, 0 }
 0x141   : > { %718 = vmatpush.bf16.xpose.msra.mxu3 %v709_v17 }
 0x147   : > { %v759_v18 = vpop.permute.xlu0 %758 }
 0x148   : > { %1294 = vmatmul.msk.bf16.vlgmr.msra.gmra.mxu3 %vm646_vm1, %v702_v11  ;;  %1296 = vmatmul.msk.bf16.vlgmr.msrb.gmra.mxu0 %vm646_vm1, %v759_v18 }
 0x149   : > { %832 = vmatpush.bf16.xpose.msrb.mxu3 %v823_v16 }
 0x158   : > { %1298 = vmatmul.msk.bf16.vlgmr.msrb.gmra.mxu3 %vm646_vm1, %v816_v8 }
 0x1bd   : > { %v662_v19 = vpop.f32.mrf.mxu1 }
 0x1be   : > { %v666_v20 = vmul.f32 0.35355338, %v662_v19 }
 0x1c0   : > { %v667_v21 = vsel %vm646_vm1, %v666_v20, -inf }
 0x1c1   : > { %668 = vmax.xlane.f32.xlu1 %v667_v21 }
 0x1c5   : > { %v664_v22 = vpop.f32.mrf.mxu1  ;;  %v777_v23 = vpop.f32.mrf.mxu0 }
 0x1c6   : > { %v781_v28 = vmul.f32 0.35355338, %v777_v23 }
 0x1c8   : > { %v782_v30 = vsel %vm646_vm1, %v781_v28, -inf }
 0x1cb   : > { %v720_v24 = vpop.f32.mrf.mxu3 }
 0x1cc   : > { %v724_v25 = vmul.f32 0.35355338, %v720_v24  ;;  %v1340_v24 = vld [vmem:[#allocation6 + $0x8] sm:$0xff] }
 0x1cd   : > { %v779_v26 = vpop.f32.mrf.mxu0  ;;  %919 = vmatpush.bf16.msra.mxu0 %v1340_v24 }
 0x1ce   : > { %v725_v27 = vsel %vm646_vm1, %v724_v25, -inf }
 0x1cf   : > { %726 = vmax.xlane.f32.xlu2 %v725_v27 }
 0x1d3   : > { %v722_v29 = vpop.f32.mrf.mxu3 }
 0x1d7   : > { %783 = vmax.xlane.f32.xlu2 %v782_v30 }
 0x1db   : > { %v834_v31 = vpop.f32.mrf.mxu3 }
 0x1dc   : > { %v838_v32 = vmul.f32 0.35355338, %v834_v31 }
 0x1de   : > { %v839_v33 = vsel %vm646_vm1, %v838_v32, -inf }
 0x1df   : > { %840 = vmax.xlane.f32.xlu0 %v839_v33  ;;  %v1484_v33 = vld [vmem:[#allocation7] ss:$0 sm:$0xff] }
 0x1e3   : > { %v836_v34 = vpop.f32.mrf.mxu3 }
 0x1e4   : > { %v604_v34 = vunpack.c.l.bf16 %v2087_v2 }
 0x1ef   : > { %679 = vrot.lane.b32.xlu2 %v2091_v6, %s1895_s20 }
 0x1f7   : > { %851 = vrot.lane.b32.xlu2 %v2091_v6, %s1896_s15  ;;  %s601_s15 = scalar_lea.vmem %s2170_s13, %s1281_s30 }
 0x234   : > { %v669_v35 = vpop.xlane.xlu1 %668 }
 0x235   : > { %v670_v36 = vsub.f32 %v666_v20, %v669_v35 }
 0x237   : > { %v671_v37 = vmul.f32 1.442695, %v670_v36 }
 0x239   : > { %1491 = vpow2.f32 %v671_v37 }
 0x23f   : > { %v1492_v38 = vpop.eup %1491 }
 0x240   : > { %v673_v39 = vsel %vm646_vm1, %v1492_v38, 0.0 }
 0x241   : > { %674 = vadd.xlane.f32.xlu1 %v673_v39 }
 0x242   : > { %v727_v40 = vpop.xlane.xlu2 %726 }
 0x243   : > { %v728_v43 = vsub.f32 %v724_v25, %v727_v40  ;;  %v1339_v25 = vld [vmem:[#allocation6] sm:$0xff]  ;;  %v1902_v40 = vmov 32.0  }
 0x244   : > { %920 = vmatpush.bf16.msra.mxu0 %v1339_v25 }
 0x245   : > { %v729_v45 = vmul.f32 1.442695, %v728_v43 }
 0x24a   : > { %v784_v41 = vpop.xlane.xlu2 %783 }
 0x24b   : > { %v785_v42 = vsub.f32 %v781_v28, %v784_v41 }
 0x24d   : > { %v786_v44 = vmul.f32 1.442695, %v785_v42 }
 0x24f   : > { %1493 = vpow2.f32 %v786_v44 }
 0x250   : > { %1495 = vpow2.f32 %v729_v45 }
 0x252   : > { %v680_v46 = vpop.permute.xlu2 %679  ;;  %v841_v47 = vpop.xlane.xlu0 %840 }
 0x253   : > { %v686_v48 = vsel %vm684_vm2, %v680_v46, 0  ;;  %v842_v50 = vsub.f32 %v838_v32, %v841_v47 }
 0x254   : > { %695 = vmatpush.bf16.msra.mxu2 %v686_v48 }
 0x255   : > { %v1494_v49 = vpop.eup %1493  ;;  %v843_v52 = vmul.f32 1.442695, %v842_v50 }
 0x256   : > { %v788_v51 = vsel %vm646_vm1, %v1494_v49, 0.0  ;;  %v1496_v53 = vpop.eup %1495 }
 0x257   : > { %789 = vadd.xlane.f32.xlu0 %v788_v51  ;;  %1497 = vpow2.f32 %v843_v52  ;;  %v731_v54 = vsel %vm646_vm1, %v1496_v53, 0.0  ;;  %v1342_v51 = vld [vmem:[#allocation12 + $0x8] sm:$0xff]  ;;  %v1341_v52 = vld [vmem:[#allocation12] sm:$0xff] }
 0x25a   : > { %737 = vrot.lane.b32.xlu1 %v2091_v6, %s1897_s24  ;;  %v852_v62 = vpop.permute.xlu2 %851 }
 0x25b   : > { %v857_v1 = vsel %vm684_vm2, %v852_v62, 0 }
 0x25d   : > { %v1498_v55 = vpop.eup %1497 }
 0x25e   : > { %v845_v56 = vsel %vm646_vm1, %v1498_v55, 0.0 }
 0x25f   : > { %732 = vadd.xlane.f32.xlu0 %v731_v54 }
 0x267   : > { %846 = vadd.xlane.f32.xlu0 %v845_v56  ;;  %v1345_v56 = vld [vmem:[%s2166_s9 + $0x10] sm:$0xff] }
 0x27b   : > { %794 = vrot.lane.b32.xlu0 %v2091_v6, %s1898_s2 }
 0x2b4   : > { %v675_v57 = vpop.xlane.xlu1 %674 }
 0x2b5   : > { %1499 = vrcp.f32 %v675_v57 }
 0x2bb   : > { %v1500_v58 = vpop.eup %1499 }
 0x2bc   : > { %v677_v59 = vmul.f32 %v1500_v58, %v1492_v38  ;;  %v1344_v58 = vld [vmem:[%s2166_s9 + $0x8] sm:$0xff] }
 0x2be   : > { %v678_v60 = vpack.c.bf16 %v677_v59, %v677_v59 }
 0x2c0   : > { %1293 = vmatmul.msk.bf16.vlgmr.msra.gmra.mxu2 %vm646_vm1, %v678_v60 }
 0x2ca   : > { %v790_v61 = vpop.xlane.xlu0 %789 }
 0x2cc   : > { %v738_v63 = vpop.permute.xlu1 %737 }
 0x2cd   : > { %v743_v0 = vsel %vm684_vm2, %v738_v63, 0 }
 0x2ce   : > { %752 = vmatpush.bf16.msrb.mxu2 %v743_v0 }
 0x2d2   : > { %866 = vmatpush.bf16.msra.mxu2 %v857_v1  ;;  %v733_v3 = vpop.xlane.xlu0 %732  ;;  %v1485_v1 = vld [vmem:[#allocation9] ss:$0 sm:$0xff] }
 0x2d3   : > { %1501 = vrcp.f32 %v733_v3 }
 0x2d9   : > { %v1502_v4 = vpop.eup %1501 }
 0x2da   : > { %v735_v5 = vmul.f32 %v1502_v4, %v1496_v53  ;;  %v847_v6 = vpop.xlane.xlu0 %846  ;;  %v1346_v53 = vld [vmem:[%s2166_s9 + $0x18] sm:$0xff]  ;;  %v1486_v4 = vld [vmem:[#allocation10] ss:$0 sm:$0xff] }
 0x2db   : > { %1503 = vrcp.f32 %v847_v6  ;;  %1049 = vmatpush.bf16.msra.mxu3 %v1346_v53 }
 0x2dc   : > { %v736_v7 = vpack.c.bf16 %v735_v5, %v735_v5  ;;  %1505 = vrcp.f32 %v790_v61 }
 0x2dd   : > { %1507 = vrcp.f32 %v1902_v40 }
 0x2de   : > { %1295 = vmatmul.msk.bf16.vlgmr.msrb.gmra.mxu2 %vm646_vm1, %v736_v7 }
 0x2df   : > { %1050 = vmatpush.bf16.msra.mxu3 %v1345_v56 }
 0x2e1   : > { %v1504_v8 = vpop.eup %1503 }
 0x2e2   : > { %v849_v9 = vmul.f32 %v1504_v8, %v1498_v55  ;;  %v1506_v10 = vpop.eup %1505 }
 0x2e3   : > { %v792_v11 = vmul.f32 %v1506_v10, %v1494_v49  ;;  %v1508_v41 = vpop.eup %1507  ;;  %1051 = vmatpush.bf16.msra.mxu3 %v1344_v58  ;;  %v1487_v10 = vld [vmem:[#allocation13] ss:$0 sm:$0xff] }
 0x2e4   : > { %v850_v12 = vpack.c.bf16 %v849_v9, %v849_v9  ;;  %v933_v42 = vmul.f32 32.0, %v1508_v41  ;;  %vm937_vm5 = vweird.f32 %v1508_v41  ;;  %v1343_v9 = vld [vmem:[%s2166_s9] sm:$0xff] }
 0x2e5   : > { %v793_v15 = vpack.c.bf16 %v792_v11, %v792_v11 }
 0x2e6   : > { %v934_v43 = vsub.f32 1.0, %v933_v42 }
 0x2e7   : > { %1052 = vmatpush.bf16.msra.mxu3 %v1343_v9 }
 0x2e8   : > { %v935_v44 = vmul.f32 %v1508_v41, %v934_v43 }
 0x2ea   : > { %v936_v45 = vadd.f32 %v1508_v41, %v935_v44 }
 0x2ec   : > { %v938_v46 = vsel %vm937_vm5, %v1508_v41, %v936_v45 }
 0x2ed   : > { %v795_v13 = vpop.permute.xlu0 %794 }
 0x2ee   : > { %1299 = vmatmul.msk.bf16.vlgmr.msra.gmra.mxu2 %vm646_vm1, %v850_v12  ;;  %v800_v14 = vsel %vm684_vm2, %v795_v13, 0 }
 0x2ef   : > { %809 = vmatpush.bf16.msrb.mxu1 %v800_v14 }
 0x2f2   : > { %1297 = vmatmul.msk.bf16.vlgmr.msrb.gmra.mxu1 %vm646_vm1, %v793_v15 }
 0x2f3   : > { %996 = vmatpush.bf16.msra.mxu1 %v1342_v51 }
 0x2f7   : > { %997 = vmatpush.bf16.msra.mxu1 %v1341_v52 }
 0x343   : > { %v697_v16 = vpop.f32.mrf.mxu2 }
 0x34b   : > { %v699_v17 = vpop.f32.mrf.mxu2 }
 0x361   : > { %v754_v18 = vpop.f32.mrf.mxu2 }
 0x362   : > { %873 = vrot.lane.b32.xlu1 %v754_v18, %s1899_s23 }
 0x369   : > { %v756_v19 = vpop.f32.mrf.mxu2 }
 0x36f   : > { %v811_v20 = vpop.f32.mrf.mxu1 }
 0x370   : > { %877 = vrot.lane.b32.xlu2 %v811_v20, %s1900_s14 }
 0x371   : > { %v868_v21 = vpop.f32.mrf.mxu2 }
 0x372   : > { %881 = vrot.lane.b32.xlu1 %v868_v21, %s1901_s22 }
 0x377   : > { %v813_v22 = vpop.f32.mrf.mxu1 }
 0x379   : > { %v870_v23 = vpop.f32.mrf.mxu2 }
 0x3ca   : > { %v878_v28 = vpop.permute.xlu2 %877 }
 0x3d4   : > { %v874_v26 = vpop.permute.xlu1 %873 }
 0x3d5   : > { %v884_v27 = vsel %vm646_vm1, %v697_v16, %v874_v26  ;;  %v1488_v16 = vld [vmem:[#allocation15] ss:$0 sm:$0xff] }
 0x3d6   : > { %v886_v30 = vsel %vm885_vm3, %v884_v27, %v878_v28 }
 0x3e4   : > { %v882_v29 = vpop.permute.xlu1 %881 }
 0x3e5   : > { %v888_v31 = vsel %vm887_vm4, %v886_v30, %v882_v29 }
 0x3e6   : > { %v889_v32 = vpack.c.bf16 %v888_v31, %v888_v31 }
 0x3e8   : > { %1308 = vmatmul.msk.bf16.vlgmr.msra.gmra.mxu0 %vm625_vm0, %v889_v32 }
 0x465   : > { %v922_v35 = vpop.f32.mrf.mxu0 }
 0x466   : > { %v923_v36 = vadd.f32 %v1484_v33, %v922_v35 }
 0x468   : > { %v926_v37 = vadd.f32 %v923_v36, %v604_v34  ;;  %v1489_v36 = vld [vmem:[#allocation16] ss:$0 sm:$0xff] }
 0x46a   : > { %v929_v38 = vsel %vm625_vm0, %v926_v37, 0.0 }
 0x46b   : > { %930 = vadd.xlane.f32.xlu2 %v929_v38  ;;  %v1490_v38 = vld [vmem:[#allocation18] ss:$0 sm:$0xff] }
 0x46d   : > { %v924_v39 = vpop.f32.mrf.mxu0 }
 0x4de   : > { %v931_v47 = vpop.xlane.xlu2 %930 }
 0x4df   : > { %v939_v48 = vmul.f32 %v938_v46, %v931_v47 }
 0x4e1   : > { %v940_v49 = vsub.f32 %v926_v37, %v939_v48 }
 0x4e3   : > { %v941_v2 = vmul.f32 %v940_v49, %v940_v49 }
 0x4e5   : > { %v942_v50 = vsel %vm625_vm0, %v941_v2, 0.0 }
 0x4e6   : > { %943 = vadd.xlane.f32.xlu1 %v942_v50 }
 0x559   : > { %v944_v54 = vpop.xlane.xlu1 %943 }
 0x55a   : > { %v945_v55 = vmul.f32 %v944_v54, %v938_v46 }
 0x55c   : > { %v946_v57 = vadd.f32 1e-12, %v945_v55 }
 0x55e   : > { %1509 = vrsqrt.f32 %v946_v57  ;;  %vm953_vm7 = vweird.f32 %v946_v57 }
 0x564   : > { %v1510_v59 = vpop.eup %1509 }
 0x565   : > { %v948_v60 = vmul.f32 %v1510_v59, %v946_v57  ;;  %vm954_vm6 = vweird.f32 %v1510_v59 }
 0x566   : > { %vm955_vm8 = vmor %vm953_vm7, %vm954_vm6 }
 0x567   : > { %v949_v61 = vmul.f32 %v1510_v59, %v948_v60 }
 0x569   : > { %v950_v62 = vmul.f32 0.5, %v949_v61 }
 0x56b   : > { %v951_v63 = vsub.f32 1.5, %v950_v62 }
 0x56d   : > { %v952_v0 = vmul.f32 %v1510_v59, %v951_v63 }
 0x56f   : > { %v956_v3 = vsel %vm955_vm8, %v1510_v59, %v952_v0 }
 0x570   : > { %v957_v5 = vmul.f32 %v956_v3, %v940_v49 }
 0x572   : > { %v961_v6 = vmul.f32 %v1485_v1, %v957_v5 }
 0x574   : > { %v965_v7 = vadd.f32 %v1486_v4, %v961_v6 }
 0x576   : > { %v966_v8 = vpack.c.bf16 %v965_v7, %v965_v7 }
 0x578   : > { %1317 = vmatmul.msk.bf16.vlgmr.msra.gmra.mxu1 %vm625_vm0, %v966_v8 }
 0x5f5   : > { %v999_v11 = vpop.f32.mrf.mxu1 }
 0x5f6   : > { %v1000_v12 = vadd.f32 %v1487_v10, %v999_v11 }
 0x5f8   : > { %v1003_v13 = vmax.f32 %v1000_v12, 0.0 }
 0x5fa   : > { %v1004_v14 = vpack.c.bf16 %v1003_v13, %v1003_v13 }
 0x5fc   : > { %1334 = vmatmul.msk.bf16.vlgmr.msra.gmra.mxu3 %vm1041_vm9, %v1004_v14 }
 0x5fd   : > { %v1001_v15 = vpop.f32.mrf.mxu1 }
 0x67f   : > { %v1054_v17 = vpop.f32.mrf.mxu3 }
 0x680   : > { %v1055_v18 = vadd.f32 %v1488_v16, %v1054_v17 }
 0x682   : > { %v1058_v19 = vadd.f32 %v1055_v18, %v965_v7 }
 0x684   : > { %v1061_v20 = vsel %vm625_vm0, %v1058_v19, 0.0 }
 0x685   : > { %1062 = vadd.xlane.f32.xlu0 %v1061_v20 }
 0x687   : > { %v1056_v21 = vpop.f32.mrf.mxu3 }
 0x6f8   : > { %v1063_v22 = vpop.xlane.xlu0 %1062 }
 0x6f9   : > { %v1064_v23 = vmul.f32 %v1063_v22, %v938_v46 }
 0x6fb   : > { %v1065_v24 = vsub.f32 %v1058_v19, %v1064_v23 }
 0x6fd   : > { %v1066_v25 = vmul.f32 %v1065_v24, %v1065_v24 }
 0x6ff   : > { %v1067_v26 = vsel %vm625_vm0, %v1066_v25, 0.0 }
 0x700   : > { %1068 = vadd.xlane.f32.xlu2 %v1067_v26 }
 0x773   : > { %v1069_v27 = vpop.xlane.xlu2 %1068 }
 0x774   : > { %v1070_v28 = vmul.f32 %v1069_v27, %v938_v46 }
 0x776   : > { %v1071_v29 = vadd.f32 1e-12, %v1070_v28 }
 0x778   : > { %1511 = vrsqrt.f32 %v1071_v29  ;;  %vm1078_vm11 = vweird.f32 %v1071_v29 }
 0x77e   : > { %v1512_v30 = vpop.eup %1511 }
 0x77f   : > { %v1073_v31 = vmul.f32 %v1512_v30, %v1071_v29  ;;  %vm1079_vm10 = vweird.f32 %v1512_v30 }
 0x780   : > { %vm1080_vm12 = vmor %vm1078_vm11, %vm1079_vm10 }
 0x781   : > { %v1074_v32 = vmul.f32 %v1512_v30, %v1073_v31 }
 0x783   : > { %v1075_v33 = vmul.f32 0.5, %v1074_v32 }
 0x785   : > { %v1076_v34 = vsub.f32 1.5, %v1075_v33 }
 0x787   : > { %v1077_v35 = vmul.f32 %v1512_v30, %v1076_v34 }
 0x789   : > { %v1081_v37 = vsel %vm1080_vm12, %v1512_v30, %v1077_v35 }
 0x78a   : > { %v1082_v39 = vmul.f32 %v1081_v37, %v1065_v24 }
 0x78c   : > { %v1086_v40 = vmul.f32 %v1489_v36, %v1082_v39 }
 0x78e   : > { %v1090_v41 = vadd.f32 %v1490_v38, %v1086_v40 }
 0x790   : > { %v1091_v42 = vpack.c.bf16 %v1090_v41, %v1090_v41 }
 0x792   : > { %1093 = vst.msk [vmem:[%s601_s15] sm:$0xf] %vm1092_vm13, %v1091_v42 }
 0x793 PF: > { %s29_s25 = sadd.s32 1, %s1873_s25  }
 0x794   : > { %p26_p7 = scmp.ge.s32.totalorder %s29_s25, 4  }
 0x796   :  { %28 = sbr.rel (!%p26_p7) target bundleno = 9 (0x9), region = 147 }
 0x79b   :  { %1113 = vsyncpa [#allocation3], 1 }
 0x79c   :  { %1115 = vsyncpa [#allocation3 + $0x1], 1 }
 0x79d   :  { %1116 = vsyncpa [#allocation5], 1 }
 0x79e   :  { %1117 = vsyncpa [#allocation8], 1 }
 0x79f   :  { %1118 = vsyncpa [#allocation11], 1 }
 0x7a0   :  { %1119 = vsyncpa [#allocation14], 1 }
 0x7a1   :  { %1120 = vsyncpa [#allocation17], 1 }

</bundles_post_ra>
